<compile_context>
chip_gen: v7x
topology: tpu7x:2x2x1
jax: 0.10.0
libtpu: 0.0.40
codegen_flags: <defaults>
</compile_context>

<pallas_src>
import functools

import jax
import jax.numpy as jnp
from jax.experimental import pallas as pl
from jax.experimental.pallas import tpu as pltpu

# ----- small, deterministic hyper-parameters consistent with __init__ --------
IMAGE_SIZE = 16
IMAGE_PATCH = 8
TRIPLANE_SIZE = 2        # number of patches along the third (depth) axis
TRIPLANE_PATCH = 1
CHANNELS = 4
DIM = 32
DEPTH = 2
HEADS = 2
DIM_HEAD = 16
MLP_DIM = 64
INNER = HEADS * DIM_HEAD

NUM_PATCHES = (IMAGE_SIZE // IMAGE_PATCH) ** 2 * TRIPLANE_SIZE     # 8
PATCH_DIM = CHANNELS * IMAGE_PATCH ** 2 * TRIPLANE_PATCH            # 256
SEQ = NUM_PATCHES + 1                                               # 9
SEQ_PAD = 16                 # padded to a sublane multiple; rows >= SEQ masked
LN_EPS = 1e-5

# Matmul operand dtype.  float32 keeps the kernel within 1e-3 of the f32
# reference; on v6e/v7x set to jnp.bfloat16 for ~2x+ MXU throughput
# (accumulation stays f32 via preferred_element_type — loosen the test
# tolerance to ~3e-2 if you flip this).
MATMUL_DTYPE = jnp.float32


# ----------------------------- shared math -----------------------------------
def _layer_norm(x, g, b):
    # x: (..., D); g, b: (1, D) — trailing-dim broadcasting covers 2-D and 3-D.
    mu = jnp.mean(x, axis=-1, keepdims=True)
    var = jnp.mean(jnp.square(x - mu), axis=-1, keepdims=True)
    return (x - mu) * jax.lax.rsqrt(var + LN_EPS) * g + b


def _mm(a, w):
    return jnp.dot(a.astype(MATMUL_DTYPE), w.astype(MATMUL_DTYPE),
                   preferred_element_type=jnp.float32)


# ------------------------------ fused kernel ----------------------------------
def _fused_vit_kernel(x_ref, w_pe_ref, pos_ref, tail_ref,
                      ln1g_ref, ln1b_ref, wqkv_ref, wout_ref, bout_ref,
                      ln2g_ref, ln2b_ref, wff1_ref, bff1_ref,
                      wff2_ref, bff2_ref, o_ref, *, bt):
    m = bt * SEQ_PAD

    # ---- patch embedding: one (bt*NP, PATCH_DIM) @ (PATCH_DIM, DIM) matmul ---
    x2 = x_ref[...].reshape(bt * NUM_PATCHES, PATCH_DIM)
    emb = _mm(x2, w_pe_ref[...])                                  # (bt*NP, DIM)

    # ---- token assembly in registers (no scratch round-trip) -----------------
    # Rows 0..NP-1: patches (+pos, bias folded in host-side).
    # Row  NP     : cls token (+its positional row), rows NP+1..15: zeros.
    # Both halves are exactly 8 sublanes -> concat & reshape are tile-aligned.
    h_patch = emb.reshape(bt, NUM_PATCHES, DIM) + pos_ref[...]
    h_tail = jnp.broadcast_to(tail_ref[...], (bt, SEQ_PAD - NUM_PATCHES, DIM))
    h = jnp.concatenate([h_patch, h_tail], axis=1).reshape(m, DIM)

    # ---- load (tiny) stacked weights once -------------------------------------
    ln1g, ln1b = ln1g_ref[...], ln1b_ref[...]
    wqkv, wout, bout = wqkv_ref[...], wout_ref[...], bout_ref[...]
    ln2g, ln2b = ln2g_ref[...], ln2b_ref[...]
    wff1, bff1 = wff1_ref[...], bff1_ref[...]
    wff2, bff2 = wff2_ref[...], bff2_ref[...]

    # Additive mask: padded key columns (j >= SEQ) get -1e30 before softmax.
    key_pos = jax.lax.broadcasted_iota(jnp.int32, (1, SEQ_PAD), 1)
    key_bias = jnp.where(key_pos >= SEQ, -1e30, 0.0).reshape(1, 1, SEQ_PAD)

    scale = DIM_HEAD ** -0.5
    for l in range(DEPTH):                                    # static unroll
        # ---- attention block: x + concat_h(attend_h(LN x)) @ Wout + b --------
        xn = _layer_norm(h, ln1g[l], ln1b[l])                 # (m, DIM)
        qkv = _mm(xn, wqkv[l])                                # fused QKV (m, 96)
        heads = []
        # HEADS=2 static unroll; per-head slices stay inside one 96-lane slab.
        for hh in range(HEADS):
            q = qkv[:, hh * DIM_HEAD:(hh + 1) * DIM_HEAD]
            k = qkv[:, INNER + hh * DIM_HEAD:INNER + (hh + 1) * DIM_HEAD]
            v = qkv[:, 2 * INNER + hh * DIM_HEAD:2 * INNER + (hh + 1) * DIM_HEAD]
            q = q.reshape(bt, SEQ_PAD, DIM_HEAD)
            k = k.reshape(bt, SEQ_PAD, DIM_HEAD)
            v = v.reshape(bt, SEQ_PAD, DIM_HEAD)
            dots = jnp.einsum('bid,bjd->bij', q, k,
                              preferred_element_type=jnp.float32) * scale
            dots = dots + key_bias
            # manual softmax (rowmax-subtract / exp / rowsum / divide)
            dots = dots - jnp.max(dots, axis=-1, keepdims=True)
            p = jnp.exp(dots)
            # TODO(synk): pl.reciprocal(denom, approx=True) would move this
            # divide onto the idle EUP slot; kept exact to hold the f32 1e-3
            # comparison against the reference.
            p = p / jnp.sum(p, axis=-1, keepdims=True)
            oh = jnp.einsum('bij,bjd->bid', p, v,
                            preferred_element_type=jnp.float32)
            heads.append(oh.reshape(m, DIM_HEAD))
        # single combined output projection: (m, INNER) @ (INNER, DIM)
        attn = _mm(jnp.concatenate(heads, axis=-1), wout[l])
        h = h + attn + bout[l]

        # ---- feed-forward block: x + W2(gelu(W1(LN x))) -----------------------
        xn2 = _layer_norm(h, ln2g[l], ln2b[l])
        f = _mm(xn2, wff1[l]) + bff1[l]
        # TODO(synk): PyTorch nn.GELU default is exact erf; tanh approximation
        # is used here for Mosaic-safe lowering (matches the in-file reference).
        f = jax.nn.gelu(f, approximate=True)
        h = h + _mm(f, wff2[l]) + bff2[l]

    # ---- drop cls + padding rows: aligned flat (bt*NP, DIM) store -------------
    # TODO(synk): for scaled-up models, fold patches into lanes ((bt, NP*DIM))
    # for a fully lane-dense store; at this size the aligned flat slab already
    # gives a contiguous HBM writeback.
    h3 = h.reshape(bt, SEQ_PAD, DIM)
    o_ref[...] = h3[:, :NUM_PATCHES, :].reshape(bt * NUM_PATCHES, DIM)


# ------------------------------- wrapper ---------------------------------------
def _rearrange_patches(triplane):
    # einops: 'b c (h p1) (w p2) (d p3) -> b (h w d) (p1 p2 p3 c)'  (glue)
    b, c, H, W, D = triplane.shape
    p, p3 = IMAGE_PATCH, TRIPLANE_PATCH
    h, w, d = H // p, W // p, D // p3
    x = triplane.reshape(b, c, h, p, w, p, d, p3)
    x = x.transpose(0, 2, 4, 6, 3, 5, 7, 1)             # b h w d p1 p2 p3 c
    return x.reshape(b, h * w * d, p * p * p3 * c)


def _pick_batch_tile(b):
    # Per-grid-step overhead is ~0.35us and every matmul has M = bt*SEQ_PAD
    # rows, so take the largest tile (up to 32 -> 512 MXU rows) that divides b.
    # For big batches keep >= 2 grid steps so dimension_semantics=("parallel",)
    # can spread tiles across both v7x TensorCores (no-op on v5e/v6e).
    if b <= 32:
        return b
    for bt in (32, 24, 16, 8):
        if b % bt == 0 and b // bt >= 2:
            return bt
    return b        # ragged batch: single step (VMEM ~10 KiB per sample)


def _pack_params(params):
    # Per-head (DEPTH, HEADS, DIM, DH) -> head-major (DEPTH, DIM, HEADS*DH),
    # then q|k|v concatenated on lanes -> (DEPTH, DIM, 3*INNER).
    def merge(w):
        return jnp.transpose(w, (0, 2, 1, 3)).reshape(DEPTH, DIM, INNER)

    w_qkv = jnp.concatenate(
        [merge(params['w_q']), merge(params['w_k']), merge(params['w_v'])],
        axis=-1)                                              # (DEPTH, DIM, 96)
    w_out = params['w_out'].reshape(DEPTH, INNER, DIM)        # head-major rows
    # Patch positional rows (cls lives at original index 0) + embedding bias.
    pos_pb = params['pos'][:, 1:] + params['b_pe']            # (1, NP, DIM)
    # Tail slab: row 0 = cls + its positional row, remaining rows = padding.
    tail = jnp.concatenate(
        [params['cls'] + params['pos'][:, 0:1],
         jnp.zeros((1, SEQ_PAD - NUM_PATCHES - 1, DIM), jnp.float32)], axis=1)
    return w_qkv, w_out, pos_pb, tail


def vit_triplane_forward(triplane, params):
    b = triplane.shape[0]
    x = _rearrange_patches(triplane)                    # (B, NUM_PATCHES, PATCH_DIM)

    bt = _pick_batch_tile(b)
    grid = (b // bt,)

    w_qkv, w_out, pos_pb, tail = _pack_params(params)

    operands = (x, params['w_pe'], pos_pb, tail,
                params['ln1_g'], params['ln1_b'], w_qkv, w_out, params['b_out'],
                params['ln2_g'], params['ln2_b'],
                params['w_ff1'], params['b_ff1'], params['w_ff2'], params['b_ff2'])

    in_specs = [pl.BlockSpec((bt, NUM_PATCHES, PATCH_DIM), lambda i: (i, 0, 0))]
    for arr in operands[1:]:
        # TODO(synk): pipeline_mode=pl.Buffered(1) on these grid-invariant
        # weights would drop their (unused) second pipeline buffer (~100 KiB);
        # skipped to keep the lowering maximally portable.
        in_specs.append(pl.BlockSpec(arr.shape, lambda i, _n=arr.ndim: (0,) * _n))

    out = pl.pallas_call(
        functools.partial(_fused_vit_kernel, bt=bt),
        out_shape=jax.ShapeDtypeStruct((b * NUM_PATCHES, DIM), jnp.float32),
        grid=grid,
        in_specs=in_specs,
        out_specs=pl.BlockSpec((bt * NUM_PATCHES, DIM), lambda i: (i, 0)),
        compiler_params=pltpu.CompilerParams(
            dimension_semantics=("parallel",),
            vmem_limit_bytes=32 * 1024 * 1024),
    )(*operands)
    return out.reshape(b, NUM_PATCHES, DIM)


# ------------------------- pure-JAX reference ----------------------------------
def vit_triplane_reference(triplane, params):
    b = triplane.shape[0]
    x = _rearrange_patches(triplane)
    emb = jnp.einsum('bnp,pd->bnd', x, params['w_pe']) + params['b_pe']
    cls = jnp.broadcast_to(params['cls'], (b, 1, DIM))
    h = jnp.concatenate([cls, emb], axis=1) + params['pos']     # (B, SEQ, DIM)
    scale = DIM_HEAD ** -0.5
    for l in range(DEPTH):
        xn = _layer_norm(h, params['ln1_g'][l], params['ln1_b'][l])
        q = jnp.einsum('bnd,hde->bhne', xn, params['w_q'][l])
        k = jnp.einsum('bnd,hde->bhne', xn, params['w_k'][l])
        v = jnp.einsum('bnd,hde->bhne', xn, params['w_v'][l])
        dots = jnp.einsum('bhie,bhje->bhij', q, k) * scale
        p = jax.nn.softmax(dots, axis=-1)
        o = jnp.einsum('bhij,bhje->bhie', p, v)
        h = h + jnp.einsum('bhne,hed->bnd', o, params['w_out'][l]) \
              + params['b_out'][l]
        xn2 = _layer_norm(h, params['ln2_g'][l], params['ln2_b'][l])
        f = jax.nn.gelu(jnp.einsum('bnd,dm->bnm', xn2, params['w_ff1'][l])
                        + params['b_ff1'][l], approximate=True)
        h = h + jnp.einsum('bnm,md->bnd', f, params['w_ff2'][l]) \
              + params['b_ff2'][l]
    return h[:, 1:]


# ------------------------------ parameters -------------------------------------
def init_params(key):
    ks = jax.random.split(key, 16)

    def lin(k, fan_in, shape):
        return jax.random.normal(k, shape, jnp.float32) / jnp.sqrt(fan_in)

    def small(k, shape):
        return 0.02 * jax.random.normal(k, shape, jnp.float32)

    return {
        'w_pe':  lin(ks[0], PATCH_DIM, (PATCH_DIM, DIM)),
        'b_pe':  small(ks[1], (1, DIM)),
        'cls':   jax.random.normal(ks[2], (1, 1, DIM), jnp.float32),
        'pos':   jax.random.normal(ks[3], (1, SEQ, DIM), jnp.float32),
        'ln1_g': jnp.ones((DEPTH, 1, DIM), jnp.float32),
        'ln1_b': jnp.zeros((DEPTH, 1, DIM), jnp.float32),
        # QKV projection split per head: (DEPTH, HEADS, DIM, DH), equivalent to
        # the PyTorch (DIM, 3*INNER) to_qkv weight (bias=False).
        'w_q':   lin(ks[4], DIM, (DEPTH, HEADS, DIM, DIM_HEAD)),
        'w_k':   lin(ks[5], DIM, (DEPTH, HEADS, DIM, DIM_HEAD)),
        'w_v':   lin(ks[6], DIM, (DEPTH, HEADS, DIM, DIM_HEAD)),
        # Output projection split along its input (head) axis.
        'w_out': lin(ks[7], INNER, (DEPTH, HEADS, DIM_HEAD, DIM)),
        'b_out': small(ks[8], (DEPTH, 1, DIM)),
        'ln2_g': jnp.ones((DEPTH, 1, DIM), jnp.float32),
        'ln2_b': jnp.zeros((DEPTH, 1, DIM), jnp.float32),
        'w_ff1': lin(ks[9], DIM, (DEPTH, DIM, MLP_DIM)),
        'b_ff1': small(ks[10], (DEPTH, 1, MLP_DIM)),
        'w_ff2': lin(ks[11], MLP_DIM, (DEPTH, MLP_DIM, DIM)),
        'b_ff2': small(ks[12], (DEPTH, 1, DIM)),
    }


if __name__ == "__main__":
    key = jax.random.PRNGKey(0)
    pkey, xkey = jax.random.split(key)
    params = init_params(pkey)

    triplane = jax.random.normal(
        xkey,
        (2, CHANNELS, IMAGE_SIZE, IMAGE_SIZE, TRIPLANE_SIZE * TRIPLANE_PATCH),
        jnp.float32)

    out = jax.block_until_ready(vit_triplane_forward(triplane, params))
    ref = jax.block_until_ready(vit_triplane_reference(triplane, params))

    assert out.shape == (2, NUM_PATCHES, DIM), out.shape
    max_err = float(jnp.max(jnp.abs(out - ref)))
    assert jnp.allclose(out, ref, rtol=1e-3, atol=1e-3), max_err
    print("KERNEL_OK")
</pallas_src>

<mosaic_0001>
module attributes {stable_mosaic.version = 11 : i64} {
  func.func @_fused_vit_kernel(%arg0: i32, %arg1: memref<2x8x256xf32, #tpu.memory_space<vmem>>, %arg2: memref<256x32xf32, #tpu.memory_space<vmem>>, %arg3: memref<1x8x32xf32, #tpu.memory_space<vmem>>, %arg4: memref<1x8x32xf32, #tpu.memory_space<vmem>>, %arg5: memref<2x1x32xf32, #tpu.memory_space<vmem>>, %arg6: memref<2x1x32xf32, #tpu.memory_space<vmem>>, %arg7: memref<2x32x96xf32, #tpu.memory_space<vmem>>, %arg8: memref<2x32x32xf32, #tpu.memory_space<vmem>>, %arg9: memref<2x1x32xf32, #tpu.memory_space<vmem>>, %arg10: memref<2x1x32xf32, #tpu.memory_space<vmem>>, %arg11: memref<2x1x32xf32, #tpu.memory_space<vmem>>, %arg12: memref<2x32x64xf32, #tpu.memory_space<vmem>>, %arg13: memref<2x1x64xf32, #tpu.memory_space<vmem>>, %arg14: memref<2x64x32xf32, #tpu.memory_space<vmem>>, %arg15: memref<2x1x32xf32, #tpu.memory_space<vmem>>, %arg16: memref<16x32xf32, #tpu.memory_space<vmem>>) attributes {dimension_semantics = [#tpu.dimension_semantics<parallel>], iteration_bounds = array<i64: 1>, scalar_prefetch = 0 : i64, scratch_operands = 0 : i64, tpu.core_type = #tpu.core_type<tc>, window_params = [{transform_indices = @transform_0, window_bounds = array<i64: 2, 8, 256>}, {pipeline_mode = #tpu.pipeline_mode<synchronous>, transform_indices = @transform_1, window_bounds = array<i64: 256, 32>}, {pipeline_mode = #tpu.pipeline_mode<synchronous>, transform_indices = @transform_2, window_bounds = array<i64: 1, 8, 32>}, {pipeline_mode = #tpu.pipeline_mode<synchronous>, transform_indices = @transform_3, window_bounds = array<i64: 1, 8, 32>}, {pipeline_mode = #tpu.pipeline_mode<synchronous>, transform_indices = @transform_4, window_bounds = array<i64: 2, 1, 32>}, {pipeline_mode = #tpu.pipeline_mode<synchronous>, transform_indices = @transform_5, window_bounds = array<i64: 2, 1, 32>}, {pipeline_mode = #tpu.pipeline_mode<synchronous>, transform_indices = @transform_6, window_bounds = array<i64: 2, 32, 96>}, {pipeline_mode = #tpu.pipeline_mode<synchronous>, transform_indices = @transform_7, window_bounds = array<i64: 2, 32, 32>}, {pipeline_mode = #tpu.pipeline_mode<synchronous>, transform_indices = @transform_8, window_bounds = array<i64: 2, 1, 32>}, {pipeline_mode = #tpu.pipeline_mode<synchronous>, transform_indices = @transform_9, window_bounds = array<i64: 2, 1, 32>}, {pipeline_mode = #tpu.pipeline_mode<synchronous>, transform_indices = @transform_10, window_bounds = array<i64: 2, 1, 32>}, {pipeline_mode = #tpu.pipeline_mode<synchronous>, transform_indices = @transform_11, window_bounds = array<i64: 2, 32, 64>}, {pipeline_mode = #tpu.pipeline_mode<synchronous>, transform_indices = @transform_12, window_bounds = array<i64: 2, 1, 64>}, {pipeline_mode = #tpu.pipeline_mode<synchronous>, transform_indices = @transform_13, window_bounds = array<i64: 2, 64, 32>}, {pipeline_mode = #tpu.pipeline_mode<synchronous>, transform_indices = @transform_14, window_bounds = array<i64: 2, 1, 32>}, {transform_indices = @transform_15, window_bounds = array<i64: 16, 32>}]} {
    %c0 = arith.constant 0 : index
    %c0_0 = arith.constant 0 : index
    %c0_1 = arith.constant 0 : index
    %0 = vector.load %arg1[%c0, %c0_0, %c0_1] : memref<2x8x256xf32, #tpu.memory_space<vmem>>, vector<2x8x256xf32>
    %1 = vector.shape_cast %0 : vector<2x8x256xf32> to vector<16x256xf32>
    %c0_2 = arith.constant 0 : index
    %c0_3 = arith.constant 0 : index
    %2 = vector.load %arg2[%c0_2, %c0_3] : memref<256x32xf32, #tpu.memory_space<vmem>>, vector<256x32xf32>
    %cst = arith.constant dense<0.000000e+00> : vector<16x32xf32>
    %3 = tpu.matmul %1, %2, %cst {dimension_numbers = #tpu.dot_dimension_numbers<[1], [0], [0], [1], [0, 0, 1, 1], [], []>} : vector<16x256xf32>, vector<256x32xf32>, vector<16x32xf32> -> vector<16x32xf32>
    %4 = vector.shape_cast %3 : vector<16x32xf32> to vector<2x8x32xf32>
    %c0_4 = arith.constant 0 : index
    %c0_5 = arith.constant 0 : index
    %c0_6 = arith.constant 0 : index
    %5 = vector.load %arg3[%c0_4, %c0_5, %c0_6] : memref<1x8x32xf32, #tpu.memory_space<vmem>>, vector<1x8x32xf32>
    %6 = vector.broadcast %5 : vector<1x8x32xf32> to vector<2x8x32xf32>
    %7 = arith.addf %4, %6 : vector<2x8x32xf32>
    %c0_7 = arith.constant 0 : index
    %c0_8 = arith.constant 0 : index
    %c0_9 = arith.constant 0 : index
    %8 = vector.load %arg4[%c0_7, %c0_8, %c0_9] : memref<1x8x32xf32, #tpu.memory_space<vmem>>, vector<1x8x32xf32>
    %9 = vector.shape_cast %8 : vector<1x8x32xf32> to vector<1x8x32xf32>
    %10 = vector.broadcast %9 : vector<1x8x32xf32> to vector<2x8x32xf32>
    %11 = tpu.concatenate %7, %10 in 1 : vector<2x8x32xf32>, vector<2x8x32xf32> -> vector<2x16x32xf32>
    %12 = vector.shape_cast %11 : vector<2x16x32xf32> to vector<32x32xf32>
    %c0_10 = arith.constant 0 : index
    %c0_11 = arith.constant 0 : index
    %c0_12 = arith.constant 0 : index
    %13 = vector.load %arg5[%c0_10, %c0_11, %c0_12] : memref<2x1x32xf32, #tpu.memory_space<vmem>>, vector<2x1x32xf32>
    %c0_13 = arith.constant 0 : index
    %c0_14 = arith.constant 0 : index
    %c0_15 = arith.constant 0 : index
    %14 = vector.load %arg6[%c0_13, %c0_14, %c0_15] : memref<2x1x32xf32, #tpu.memory_space<vmem>>, vector<2x1x32xf32>
    %c0_16 = arith.constant 0 : index
    %c0_17 = arith.constant 0 : index
    %c0_18 = arith.constant 0 : index
    %15 = vector.load %arg7[%c0_16, %c0_17, %c0_18] : memref<2x32x96xf32, #tpu.memory_space<vmem>>, vector<2x32x96xf32>
    %c0_19 = arith.constant 0 : index
    %c0_20 = arith.constant 0 : index
    %c0_21 = arith.constant 0 : index
    %16 = vector.load %arg8[%c0_19, %c0_20, %c0_21] : memref<2x32x32xf32, #tpu.memory_space<vmem>>, vector<2x32x32xf32>
    %c0_22 = arith.constant 0 : index
    %c0_23 = arith.constant 0 : index
    %c0_24 = arith.constant 0 : index
    %17 = vector.load %arg9[%c0_22, %c0_23, %c0_24] : memref<2x1x32xf32, #tpu.memory_space<vmem>>, vector<2x1x32xf32>
    %c0_25 = arith.constant 0 : index
    %c0_26 = arith.constant 0 : index
    %c0_27 = arith.constant 0 : index
    %18 = vector.load %arg10[%c0_25, %c0_26, %c0_27] : memref<2x1x32xf32, #tpu.memory_space<vmem>>, vector<2x1x32xf32>
    %c0_28 = arith.constant 0 : index
    %c0_29 = arith.constant 0 : index
    %c0_30 = arith.constant 0 : index
    %19 = vector.load %arg11[%c0_28, %c0_29, %c0_30] : memref<2x1x32xf32, #tpu.memory_space<vmem>>, vector<2x1x32xf32>
    %c0_31 = arith.constant 0 : index
    %c0_32 = arith.constant 0 : index
    %c0_33 = arith.constant 0 : index
    %20 = vector.load %arg12[%c0_31, %c0_32, %c0_33] : memref<2x32x64xf32, #tpu.memory_space<vmem>>, vector<2x32x64xf32>
    %c0_34 = arith.constant 0 : index
    %c0_35 = arith.constant 0 : index
    %c0_36 = arith.constant 0 : index
    %21 = vector.load %arg13[%c0_34, %c0_35, %c0_36] : memref<2x1x64xf32, #tpu.memory_space<vmem>>, vector<2x1x64xf32>
    %c0_37 = arith.constant 0 : index
    %c0_38 = arith.constant 0 : index
    %c0_39 = arith.constant 0 : index
    %22 = vector.load %arg14[%c0_37, %c0_38, %c0_39] : memref<2x64x32xf32, #tpu.memory_space<vmem>>, vector<2x64x32xf32>
    %c0_40 = arith.constant 0 : index
    %c0_41 = arith.constant 0 : index
    %c0_42 = arith.constant 0 : index
    %23 = vector.load %arg15[%c0_40, %c0_41, %c0_42] : memref<2x1x32xf32, #tpu.memory_space<vmem>>, vector<2x1x32xf32>
    %24 = tpu.iota {dimensions = array<i32: 1>} : vector<1x16xi32>
    %c9_i32 = arith.constant 9 : i32
    %25 = vector.broadcast %c9_i32 : i32 to vector<1x16xi32>
    %26 = arith.cmpi sge, %24, %25 : vector<1x16xi32>
    %cst_43 = arith.constant -1.000000e+30 : f32
    %cst_44 = arith.constant 0.000000e+00 : f32
    %27 = vector.broadcast %cst_43 : f32 to vector<1x16xf32>
    %28 = vector.broadcast %cst_44 : f32 to vector<1x16xf32>
    %29 = arith.select %26, %27, %28 : vector<1x16xi1>, vector<1x16xf32>
    %30 = vector.shape_cast %29 : vector<1x16xf32> to vector<1x1x16xf32>
    %31 = vector.extract_strided_slice %13 {offsets = [0, 0, 0], sizes = [1, 1, 32], strides = [1, 1, 1]} : vector<2x1x32xf32> to vector<1x1x32xf32>
    %32 = vector.shape_cast %31 : vector<1x1x32xf32> to vector<1x32xf32>
    %33 = vector.extract_strided_slice %14 {offsets = [0, 0, 0], sizes = [1, 1, 32], strides = [1, 1, 1]} : vector<2x1x32xf32> to vector<1x1x32xf32>
    %34 = vector.shape_cast %33 : vector<1x1x32xf32> to vector<1x32xf32>
    %cst_45 = arith.constant dense<0.000000e+00> : vector<32xf32>
    %35 = vector.multi_reduction <add>, %12, %cst_45 [1] : vector<32x32xf32> to vector<32xf32>
    %36 = vector.shape_cast %35 : vector<32xf32> to vector<32x1xf32>
    %cst_46 = arith.constant 3.200000e+01 : f32
    %37 = vector.broadcast %cst_46 : f32 to vector<32x1xf32>
    %38 = arith.divf %36, %37 : vector<32x1xf32>
    %39 = vector.broadcast %38 : vector<32x1xf32> to vector<32x32xf32>
    %40 = arith.subf %12, %39 : vector<32x32xf32>
    %41 = arith.mulf %40, %40 : vector<32x32xf32>
    %cst_47 = arith.constant dense<0.000000e+00> : vector<32xf32>
    %42 = vector.multi_reduction <add>, %41, %cst_47 [1] : vector<32x32xf32> to vector<32xf32>
    %43 = vector.shape_cast %42 : vector<32xf32> to vector<32x1xf32>
    %cst_48 = arith.constant 3.200000e+01 : f32
    %44 = vector.broadcast %cst_48 : f32 to vector<32x1xf32>
    %45 = arith.divf %43, %44 : vector<32x1xf32>
    %46 = vector.broadcast %38 : vector<32x1xf32> to vector<32x32xf32>
    %47 = arith.subf %12, %46 : vector<32x32xf32>
    %cst_49 = arith.constant 9.99999974E-6 : f32
    %48 = vector.broadcast %cst_49 : f32 to vector<32x1xf32>
    %49 = arith.addf %45, %48 : vector<32x1xf32>
    %50 = math.rsqrt %49 : vector<32x1xf32>
    %51 = vector.broadcast %50 : vector<32x1xf32> to vector<32x32xf32>
    %52 = arith.mulf %47, %51 : vector<32x32xf32>
    %53 = vector.broadcast %32 : vector<1x32xf32> to vector<32x32xf32>
    %54 = arith.mulf %52, %53 : vector<32x32xf32>
    %55 = vector.broadcast %34 : vector<1x32xf32> to vector<32x32xf32>
    %56 = arith.addf %54, %55 : vector<32x32xf32>
    %57 = vector.extract_strided_slice %15 {offsets = [0, 0, 0], sizes = [1, 32, 96], strides = [1, 1, 1]} : vector<2x32x96xf32> to vector<1x32x96xf32>
    %58 = vector.shape_cast %57 : vector<1x32x96xf32> to vector<32x96xf32>
    %cst_50 = arith.constant dense<0.000000e+00> : vector<32x96xf32>
    %59 = tpu.matmul %56, %58, %cst_50 {dimension_numbers = #tpu.dot_dimension_numbers<[1], [0], [0], [1], [0, 0, 1, 1], [], []>} : vector<32x32xf32>, vector<32x96xf32>, vector<32x96xf32> -> vector<32x96xf32>
    %60 = vector.extract_strided_slice %59 {offsets = [0, 0], sizes = [32, 16], strides = [1, 1]} : vector<32x96xf32> to vector<32x16xf32>
    %61 = vector.extract_strided_slice %59 {offsets = [0, 32], sizes = [32, 16], strides = [1, 1]} : vector<32x96xf32> to vector<32x16xf32>
    %62 = vector.extract_strided_slice %59 {offsets = [0, 64], sizes = [32, 16], strides = [1, 1]} : vector<32x96xf32> to vector<32x16xf32>
    %63 = vector.shape_cast %60 : vector<32x16xf32> to vector<2x16x16xf32>
    %64 = vector.shape_cast %61 : vector<32x16xf32> to vector<2x16x16xf32>
    %65 = vector.shape_cast %62 : vector<32x16xf32> to vector<2x16x16xf32>
    "tpu.trace_start"() <{level = 10 : i32, message = "bid,bjd->bij"}> : () -> ()
    %cst_51 = arith.constant dense<0.000000e+00> : vector<2x16x16xf32>
    %66 = tpu.matmul %63, %64, %cst_51 {dimension_numbers = #tpu.dot_dimension_numbers<[2], [2], [1], [1], [0, 0, 0, 1, 1, 1], [0], [0]>} : vector<2x16x16xf32>, vector<2x16x16xf32>, vector<2x16x16xf32> -> vector<2x16x16xf32>
    "tpu.trace_stop"() : () -> ()
    %cst_52 = arith.constant 2.500000e-01 : f32
    %67 = vector.broadcast %cst_52 : f32 to vector<2x16x16xf32>
    %68 = arith.mulf %66, %67 : vector<2x16x16xf32>
    %69 = vector.broadcast %30 : vector<1x1x16xf32> to vector<2x16x16xf32>
    %70 = arith.addf %68, %69 : vector<2x16x16xf32>
    %cst_53 = arith.constant dense<0xFF800000> : vector<2x16xf32>
    %71 = vector.multi_reduction <maximumf>, %70, %cst_53 [2] : vector<2x16x16xf32> to vector<2x16xf32>
    %72 = vector.shape_cast %71 : vector<2x16xf32> to vector<2x16x1xf32>
    %73 = vector.broadcast %72 : vector<2x16x1xf32> to vector<2x16x16xf32>
    %74 = arith.subf %70, %73 : vector<2x16x16xf32>
    %75 = math.exp %74 : vector<2x16x16xf32>
    %cst_54 = arith.constant dense<0.000000e+00> : vector<2x16xf32>
    %76 = vector.multi_reduction <add>, %75, %cst_54 [2] : vector<2x16x16xf32> to vector<2x16xf32>
    %77 = vector.shape_cast %76 : vector<2x16xf32> to vector<2x16x1xf32>
    %78 = vector.broadcast %77 : vector<2x16x1xf32> to vector<2x16x16xf32>
    %79 = arith.divf %75, %78 : vector<2x16x16xf32>
    "tpu.trace_start"() <{level = 10 : i32, message = "bij,bjd->bid"}> : () -> ()
    %cst_55 = arith.constant dense<0.000000e+00> : vector<2x16x16xf32>
    %80 = tpu.matmul %79, %65, %cst_55 {dimension_numbers = #tpu.dot_dimension_numbers<[2], [1], [1], [2], [0, 0, 0, 1, 1, 2], [0], [0]>} : vector<2x16x16xf32>, vector<2x16x16xf32>, vector<2x16x16xf32> -> vector<2x16x16xf32>
    "tpu.trace_stop"() : () -> ()
    %81 = vector.shape_cast %80 : vector<2x16x16xf32> to vector<32x16xf32>
    %82 = vector.extract_strided_slice %59 {offsets = [0, 16], sizes = [32, 16], strides = [1, 1]} : vector<32x96xf32> to vector<32x16xf32>
    %83 = vector.extract_strided_slice %59 {offsets = [0, 48], sizes = [32, 16], strides = [1, 1]} : vector<32x96xf32> to vector<32x16xf32>
    %84 = vector.extract_strided_slice %59 {offsets = [0, 80], sizes = [32, 16], strides = [1, 1]} : vector<32x96xf32> to vector<32x16xf32>
    %85 = vector.shape_cast %82 : vector<32x16xf32> to vector<2x16x16xf32>
    %86 = vector.shape_cast %83 : vector<32x16xf32> to vector<2x16x16xf32>
    %87 = vector.shape_cast %84 : vector<32x16xf32> to vector<2x16x16xf32>
    "tpu.trace_start"() <{level = 10 : i32, message = "bid,bjd->bij"}> : () -> ()
    %cst_56 = arith.constant dense<0.000000e+00> : vector<2x16x16xf32>
    %88 = tpu.matmul %85, %86, %cst_56 {dimension_numbers = #tpu.dot_dimension_numbers<[2], [2], [1], [1], [0, 0, 0, 1, 1, 1], [0], [0]>} : vector<2x16x16xf32>, vector<2x16x16xf32>, vector<2x16x16xf32> -> vector<2x16x16xf32>
    "tpu.trace_stop"() : () -> ()
    %cst_57 = arith.constant 2.500000e-01 : f32
    %89 = vector.broadcast %cst_57 : f32 to vector<2x16x16xf32>
    %90 = arith.mulf %88, %89 : vector<2x16x16xf32>
    %91 = vector.broadcast %30 : vector<1x1x16xf32> to vector<2x16x16xf32>
    %92 = arith.addf %90, %91 : vector<2x16x16xf32>
    %cst_58 = arith.constant dense<0xFF800000> : vector<2x16xf32>
    %93 = vector.multi_reduction <maximumf>, %92, %cst_58 [2] : vector<2x16x16xf32> to vector<2x16xf32>
    %94 = vector.shape_cast %93 : vector<2x16xf32> to vector<2x16x1xf32>
    %95 = vector.broadcast %94 : vector<2x16x1xf32> to vector<2x16x16xf32>
    %96 = arith.subf %92, %95 : vector<2x16x16xf32>
    %97 = math.exp %96 : vector<2x16x16xf32>
    %cst_59 = arith.constant dense<0.000000e+00> : vector<2x16xf32>
    %98 = vector.multi_reduction <add>, %97, %cst_59 [2] : vector<2x16x16xf32> to vector<2x16xf32>
    %99 = vector.shape_cast %98 : vector<2x16xf32> to vector<2x16x1xf32>
    %100 = vector.broadcast %99 : vector<2x16x1xf32> to vector<2x16x16xf32>
    %101 = arith.divf %97, %100 : vector<2x16x16xf32>
    "tpu.trace_start"() <{level = 10 : i32, message = "bij,bjd->bid"}> : () -> ()
    %cst_60 = arith.constant dense<0.000000e+00> : vector<2x16x16xf32>
    %102 = tpu.matmul %101, %87, %cst_60 {dimension_numbers = #tpu.dot_dimension_numbers<[2], [1], [1], [2], [0, 0, 0, 1, 1, 2], [0], [0]>} : vector<2x16x16xf32>, vector<2x16x16xf32>, vector<2x16x16xf32> -> vector<2x16x16xf32>
    "tpu.trace_stop"() : () -> ()
    %103 = vector.shape_cast %102 : vector<2x16x16xf32> to vector<32x16xf32>
    %104 = tpu.concatenate %81, %103 in 1 : vector<32x16xf32>, vector<32x16xf32> -> vector<32x32xf32>
    %105 = vector.extract_strided_slice %16 {offsets = [0, 0, 0], sizes = [1, 32, 32], strides = [1, 1, 1]} : vector<2x32x32xf32> to vector<1x32x32xf32>
    %106 = vector.shape_cast %105 : vector<1x32x32xf32> to vector<32x32xf32>
    %cst_61 = arith.constant dense<0.000000e+00> : vector<32x32xf32>
    %107 = tpu.matmul %104, %106, %cst_61 {dimension_numbers = #tpu.dot_dimension_numbers<[1], [0], [0], [1], [0, 0, 1, 1], [], []>} : vector<32x32xf32>, vector<32x32xf32>, vector<32x32xf32> -> vector<32x32xf32>
    %108 = arith.addf %12, %107 : vector<32x32xf32>
    %109 = vector.extract_strided_slice %17 {offsets = [0, 0, 0], sizes = [1, 1, 32], strides = [1, 1, 1]} : vector<2x1x32xf32> to vector<1x1x32xf32>
    %110 = vector.shape_cast %109 : vector<1x1x32xf32> to vector<1x32xf32>
    %111 = vector.broadcast %110 : vector<1x32xf32> to vector<32x32xf32>
    %112 = arith.addf %108, %111 : vector<32x32xf32>
    %113 = vector.extract_strided_slice %18 {offsets = [0, 0, 0], sizes = [1, 1, 32], strides = [1, 1, 1]} : vector<2x1x32xf32> to vector<1x1x32xf32>
    %114 = vector.shape_cast %113 : vector<1x1x32xf32> to vector<1x32xf32>
    %115 = vector.extract_strided_slice %19 {offsets = [0, 0, 0], sizes = [1, 1, 32], strides = [1, 1, 1]} : vector<2x1x32xf32> to vector<1x1x32xf32>
    %116 = vector.shape_cast %115 : vector<1x1x32xf32> to vector<1x32xf32>
    %cst_62 = arith.constant dense<0.000000e+00> : vector<32xf32>
    %117 = vector.multi_reduction <add>, %112, %cst_62 [1] : vector<32x32xf32> to vector<32xf32>
    %118 = vector.shape_cast %117 : vector<32xf32> to vector<32x1xf32>
    %cst_63 = arith.constant 3.200000e+01 : f32
    %119 = vector.broadcast %cst_63 : f32 to vector<32x1xf32>
    %120 = arith.divf %118, %119 : vector<32x1xf32>
    %121 = vector.broadcast %120 : vector<32x1xf32> to vector<32x32xf32>
    %122 = arith.subf %112, %121 : vector<32x32xf32>
    %123 = arith.mulf %122, %122 : vector<32x32xf32>
    %cst_64 = arith.constant dense<0.000000e+00> : vector<32xf32>
    %124 = vector.multi_reduction <add>, %123, %cst_64 [1] : vector<32x32xf32> to vector<32xf32>
    %125 = vector.shape_cast %124 : vector<32xf32> to vector<32x1xf32>
    %cst_65 = arith.constant 3.200000e+01 : f32
    %126 = vector.broadcast %cst_65 : f32 to vector<32x1xf32>
    %127 = arith.divf %125, %126 : vector<32x1xf32>
    %128 = vector.broadcast %120 : vector<32x1xf32> to vector<32x32xf32>
    %129 = arith.subf %112, %128 : vector<32x32xf32>
    %cst_66 = arith.constant 9.99999974E-6 : f32
    %130 = vector.broadcast %cst_66 : f32 to vector<32x1xf32>
    %131 = arith.addf %127, %130 : vector<32x1xf32>
    %132 = math.rsqrt %131 : vector<32x1xf32>
    %133 = vector.broadcast %132 : vector<32x1xf32> to vector<32x32xf32>
    %134 = arith.mulf %129, %133 : vector<32x32xf32>
    %135 = vector.broadcast %114 : vector<1x32xf32> to vector<32x32xf32>
    %136 = arith.mulf %134, %135 : vector<32x32xf32>
    %137 = vector.broadcast %116 : vector<1x32xf32> to vector<32x32xf32>
    %138 = arith.addf %136, %137 : vector<32x32xf32>
    %139 = vector.extract_strided_slice %20 {offsets = [0, 0, 0], sizes = [1, 32, 64], strides = [1, 1, 1]} : vector<2x32x64xf32> to vector<1x32x64xf32>
    %140 = vector.shape_cast %139 : vector<1x32x64xf32> to vector<32x64xf32>
    %cst_67 = arith.constant dense<0.000000e+00> : vector<32x64xf32>
    %141 = tpu.matmul %138, %140, %cst_67 {dimension_numbers = #tpu.dot_dimension_numbers<[1], [0], [0], [1], [0, 0, 1, 1], [], []>} : vector<32x32xf32>, vector<32x64xf32>, vector<32x64xf32> -> vector<32x64xf32>
    %142 = vector.extract_strided_slice %21 {offsets = [0, 0, 0], sizes = [1, 1, 64], strides = [1, 1, 1]} : vector<2x1x64xf32> to vector<1x1x64xf32>
    %143 = vector.shape_cast %142 : vector<1x1x64xf32> to vector<1x64xf32>
    %144 = vector.broadcast %143 : vector<1x64xf32> to vector<32x64xf32>
    %145 = arith.addf %141, %144 : vector<32x64xf32>
    %146 = arith.mulf %145, %145 : vector<32x64xf32>
    %147 = arith.mulf %145, %146 : vector<32x64xf32>
    %cst_68 = arith.constant 4.471500e-02 : f32
    %148 = vector.broadcast %cst_68 : f32 to vector<32x64xf32>
    %149 = arith.mulf %148, %147 : vector<32x64xf32>
    %150 = arith.addf %145, %149 : vector<32x64xf32>
    %cst_69 = arith.constant 0.797884583 : f32
    %151 = vector.broadcast %cst_69 : f32 to vector<32x64xf32>
    %152 = arith.mulf %151, %150 : vector<32x64xf32>
    %153 = math.tanh %152 : vector<32x64xf32>
    %cst_70 = arith.constant 1.000000e+00 : f32
    %154 = vector.broadcast %cst_70 : f32 to vector<32x64xf32>
    %155 = arith.addf %154, %153 : vector<32x64xf32>
    %cst_71 = arith.constant 5.000000e-01 : f32
    %156 = vector.broadcast %cst_71 : f32 to vector<32x64xf32>
    %157 = arith.mulf %156, %155 : vector<32x64xf32>
    %158 = arith.mulf %145, %157 : vector<32x64xf32>
    %159 = vector.extract_strided_slice %22 {offsets = [0, 0, 0], sizes = [1, 64, 32], strides = [1, 1, 1]} : vector<2x64x32xf32> to vector<1x64x32xf32>
    %160 = vector.shape_cast %159 : vector<1x64x32xf32> to vector<64x32xf32>
    %cst_72 = arith.constant dense<0.000000e+00> : vector<32x32xf32>
    %161 = tpu.matmul %158, %160, %cst_72 {dimension_numbers = #tpu.dot_dimension_numbers<[1], [0], [0], [1], [0, 0, 1, 1], [], []>} : vector<32x64xf32>, vector<64x32xf32>, vector<32x32xf32> -> vector<32x32xf32>
    %162 = arith.addf %112, %161 : vector<32x32xf32>
    %163 = vector.extract_strided_slice %23 {offsets = [0, 0, 0], sizes = [1, 1, 32], strides = [1, 1, 1]} : vector<2x1x32xf32> to vector<1x1x32xf32>
    %164 = vector.shape_cast %163 : vector<1x1x32xf32> to vector<1x32xf32>
    %165 = vector.broadcast %164 : vector<1x32xf32> to vector<32x32xf32>
    %166 = arith.addf %162, %165 : vector<32x32xf32>
    %167 = vector.extract_strided_slice %13 {offsets = [1, 0, 0], sizes = [1, 1, 32], strides = [1, 1, 1]} : vector<2x1x32xf32> to vector<1x1x32xf32>
    %168 = vector.shape_cast %167 : vector<1x1x32xf32> to vector<1x32xf32>
    %169 = vector.extract_strided_slice %14 {offsets = [1, 0, 0], sizes = [1, 1, 32], strides = [1, 1, 1]} : vector<2x1x32xf32> to vector<1x1x32xf32>
    %170 = vector.shape_cast %169 : vector<1x1x32xf32> to vector<1x32xf32>
    %cst_73 = arith.constant dense<0.000000e+00> : vector<32xf32>
    %171 = vector.multi_reduction <add>, %166, %cst_73 [1] : vector<32x32xf32> to vector<32xf32>
    %172 = vector.shape_cast %171 : vector<32xf32> to vector<32x1xf32>
    %cst_74 = arith.constant 3.200000e+01 : f32
    %173 = vector.broadcast %cst_74 : f32 to vector<32x1xf32>
    %174 = arith.divf %172, %173 : vector<32x1xf32>
    %175 = vector.broadcast %174 : vector<32x1xf32> to vector<32x32xf32>
    %176 = arith.subf %166, %175 : vector<32x32xf32>
    %177 = arith.mulf %176, %176 : vector<32x32xf32>
    %cst_75 = arith.constant dense<0.000000e+00> : vector<32xf32>
    %178 = vector.multi_reduction <add>, %177, %cst_75 [1] : vector<32x32xf32> to vector<32xf32>
    %179 = vector.shape_cast %178 : vector<32xf32> to vector<32x1xf32>
    %cst_76 = arith.constant 3.200000e+01 : f32
    %180 = vector.broadcast %cst_76 : f32 to vector<32x1xf32>
    %181 = arith.divf %179, %180 : vector<32x1xf32>
    %182 = vector.broadcast %174 : vector<32x1xf32> to vector<32x32xf32>
    %183 = arith.subf %166, %182 : vector<32x32xf32>
    %cst_77 = arith.constant 9.99999974E-6 : f32
    %184 = vector.broadcast %cst_77 : f32 to vector<32x1xf32>
    %185 = arith.addf %181, %184 : vector<32x1xf32>
    %186 = math.rsqrt %185 : vector<32x1xf32>
    %187 = vector.broadcast %186 : vector<32x1xf32> to vector<32x32xf32>
    %188 = arith.mulf %183, %187 : vector<32x32xf32>
    %189 = vector.broadcast %168 : vector<1x32xf32> to vector<32x32xf32>
    %190 = arith.mulf %188, %189 : vector<32x32xf32>
    %191 = vector.broadcast %170 : vector<1x32xf32> to vector<32x32xf32>
    %192 = arith.addf %190, %191 : vector<32x32xf32>
    %193 = vector.extract_strided_slice %15 {offsets = [1, 0, 0], sizes = [1, 32, 96], strides = [1, 1, 1]} : vector<2x32x96xf32> to vector<1x32x96xf32>
    %194 = vector.shape_cast %193 : vector<1x32x96xf32> to vector<32x96xf32>
    %cst_78 = arith.constant dense<0.000000e+00> : vector<32x96xf32>
    %195 = tpu.matmul %192, %194, %cst_78 {dimension_numbers = #tpu.dot_dimension_numbers<[1], [0], [0], [1], [0, 0, 1, 1], [], []>} : vector<32x32xf32>, vector<32x96xf32>, vector<32x96xf32> -> vector<32x96xf32>
    %196 = vector.extract_strided_slice %195 {offsets = [0, 0], sizes = [32, 16], strides = [1, 1]} : vector<32x96xf32> to vector<32x16xf32>
    %197 = vector.extract_strided_slice %195 {offsets = [0, 32], sizes = [32, 16], strides = [1, 1]} : vector<32x96xf32> to vector<32x16xf32>
    %198 = vector.extract_strided_slice %195 {offsets = [0, 64], sizes = [32, 16], strides = [1, 1]} : vector<32x96xf32> to vector<32x16xf32>
    %199 = vector.shape_cast %196 : vector<32x16xf32> to vector<2x16x16xf32>
    %200 = vector.shape_cast %197 : vector<32x16xf32> to vector<2x16x16xf32>
    %201 = vector.shape_cast %198 : vector<32x16xf32> to vector<2x16x16xf32>
    "tpu.trace_start"() <{level = 10 : i32, message = "bid,bjd->bij"}> : () -> ()
    %cst_79 = arith.constant dense<0.000000e+00> : vector<2x16x16xf32>
    %202 = tpu.matmul %199, %200, %cst_79 {dimension_numbers = #tpu.dot_dimension_numbers<[2], [2], [1], [1], [0, 0, 0, 1, 1, 1], [0], [0]>} : vector<2x16x16xf32>, vector<2x16x16xf32>, vector<2x16x16xf32> -> vector<2x16x16xf32>
    "tpu.trace_stop"() : () -> ()
    %cst_80 = arith.constant 2.500000e-01 : f32
    %203 = vector.broadcast %cst_80 : f32 to vector<2x16x16xf32>
    %204 = arith.mulf %202, %203 : vector<2x16x16xf32>
    %205 = vector.broadcast %30 : vector<1x1x16xf32> to vector<2x16x16xf32>
    %206 = arith.addf %204, %205 : vector<2x16x16xf32>
    %cst_81 = arith.constant dense<0xFF800000> : vector<2x16xf32>
    %207 = vector.multi_reduction <maximumf>, %206, %cst_81 [2] : vector<2x16x16xf32> to vector<2x16xf32>
    %208 = vector.shape_cast %207 : vector<2x16xf32> to vector<2x16x1xf32>
    %209 = vector.broadcast %208 : vector<2x16x1xf32> to vector<2x16x16xf32>
    %210 = arith.subf %206, %209 : vector<2x16x16xf32>
    %211 = math.exp %210 : vector<2x16x16xf32>
    %cst_82 = arith.constant dense<0.000000e+00> : vector<2x16xf32>
    %212 = vector.multi_reduction <add>, %211, %cst_82 [2] : vector<2x16x16xf32> to vector<2x16xf32>
    %213 = vector.shape_cast %212 : vector<2x16xf32> to vector<2x16x1xf32>
    %214 = vector.broadcast %213 : vector<2x16x1xf32> to vector<2x16x16xf32>
    %215 = arith.divf %211, %214 : vector<2x16x16xf32>
    "tpu.trace_start"() <{level = 10 : i32, message = "bij,bjd->bid"}> : () -> ()
    %cst_83 = arith.constant dense<0.000000e+00> : vector<2x16x16xf32>
    %216 = tpu.matmul %215, %201, %cst_83 {dimension_numbers = #tpu.dot_dimension_numbers<[2], [1], [1], [2], [0, 0, 0, 1, 1, 2], [0], [0]>} : vector<2x16x16xf32>, vector<2x16x16xf32>, vector<2x16x16xf32> -> vector<2x16x16xf32>
    "tpu.trace_stop"() : () -> ()
    %217 = vector.shape_cast %216 : vector<2x16x16xf32> to vector<32x16xf32>
    %218 = vector.extract_strided_slice %195 {offsets = [0, 16], sizes = [32, 16], strides = [1, 1]} : vector<32x96xf32> to vector<32x16xf32>
    %219 = vector.extract_strided_slice %195 {offsets = [0, 48], sizes = [32, 16], strides = [1, 1]} : vector<32x96xf32> to vector<32x16xf32>
    %220 = vector.extract_strided_slice %195 {offsets = [0, 80], sizes = [32, 16], strides = [1, 1]} : vector<32x96xf32> to vector<32x16xf32>
    %221 = vector.shape_cast %218 : vector<32x16xf32> to vector<2x16x16xf32>
    %222 = vector.shape_cast %219 : vector<32x16xf32> to vector<2x16x16xf32>
    %223 = vector.shape_cast %220 : vector<32x16xf32> to vector<2x16x16xf32>
    "tpu.trace_start"() <{level = 10 : i32, message = "bid,bjd->bij"}> : () -> ()
    %cst_84 = arith.constant dense<0.000000e+00> : vector<2x16x16xf32>
    %224 = tpu.matmul %221, %222, %cst_84 {dimension_numbers = #tpu.dot_dimension_numbers<[2], [2], [1], [1], [0, 0, 0, 1, 1, 1], [0], [0]>} : vector<2x16x16xf32>, vector<2x16x16xf32>, vector<2x16x16xf32> -> vector<2x16x16xf32>
    "tpu.trace_stop"() : () -> ()
    %cst_85 = arith.constant 2.500000e-01 : f32
    %225 = vector.broadcast %cst_85 : f32 to vector<2x16x16xf32>
    %226 = arith.mulf %224, %225 : vector<2x16x16xf32>
    %227 = vector.broadcast %30 : vector<1x1x16xf32> to vector<2x16x16xf32>
    %228 = arith.addf %226, %227 : vector<2x16x16xf32>
    %cst_86 = arith.constant dense<0xFF800000> : vector<2x16xf32>
    %229 = vector.multi_reduction <maximumf>, %228, %cst_86 [2] : vector<2x16x16xf32> to vector<2x16xf32>
    %230 = vector.shape_cast %229 : vector<2x16xf32> to vector<2x16x1xf32>
    %231 = vector.broadcast %230 : vector<2x16x1xf32> to vector<2x16x16xf32>
    %232 = arith.subf %228, %231 : vector<2x16x16xf32>
    %233 = math.exp %232 : vector<2x16x16xf32>
    %cst_87 = arith.constant dense<0.000000e+00> : vector<2x16xf32>
    %234 = vector.multi_reduction <add>, %233, %cst_87 [2] : vector<2x16x16xf32> to vector<2x16xf32>
    %235 = vector.shape_cast %234 : vector<2x16xf32> to vector<2x16x1xf32>
    %236 = vector.broadcast %235 : vector<2x16x1xf32> to vector<2x16x16xf32>
    %237 = arith.divf %233, %236 : vector<2x16x16xf32>
    "tpu.trace_start"() <{level = 10 : i32, message = "bij,bjd->bid"}> : () -> ()
    %cst_88 = arith.constant dense<0.000000e+00> : vector<2x16x16xf32>
    %238 = tpu.matmul %237, %223, %cst_88 {dimension_numbers = #tpu.dot_dimension_numbers<[2], [1], [1], [2], [0, 0, 0, 1, 1, 2], [0], [0]>} : vector<2x16x16xf32>, vector<2x16x16xf32>, vector<2x16x16xf32> -> vector<2x16x16xf32>
    "tpu.trace_stop"() : () -> ()
    %239 = vector.shape_cast %238 : vector<2x16x16xf32> to vector<32x16xf32>
    %240 = tpu.concatenate %217, %239 in 1 : vector<32x16xf32>, vector<32x16xf32> -> vector<32x32xf32>
    %241 = vector.extract_strided_slice %16 {offsets = [1, 0, 0], sizes = [1, 32, 32], strides = [1, 1, 1]} : vector<2x32x32xf32> to vector<1x32x32xf32>
    %242 = vector.shape_cast %241 : vector<1x32x32xf32> to vector<32x32xf32>
    %cst_89 = arith.constant dense<0.000000e+00> : vector<32x32xf32>
    %243 = tpu.matmul %240, %242, %cst_89 {dimension_numbers = #tpu.dot_dimension_numbers<[1], [0], [0], [1], [0, 0, 1, 1], [], []>} : vector<32x32xf32>, vector<32x32xf32>, vector<32x32xf32> -> vector<32x32xf32>
    %244 = arith.addf %166, %243 : vector<32x32xf32>
    %245 = vector.extract_strided_slice %17 {offsets = [1, 0, 0], sizes = [1, 1, 32], strides = [1, 1, 1]} : vector<2x1x32xf32> to vector<1x1x32xf32>
    %246 = vector.shape_cast %245 : vector<1x1x32xf32> to vector<1x32xf32>
    %247 = vector.broadcast %246 : vector<1x32xf32> to vector<32x32xf32>
    %248 = arith.addf %244, %247 : vector<32x32xf32>
    %249 = vector.extract_strided_slice %18 {offsets = [1, 0, 0], sizes = [1, 1, 32], strides = [1, 1, 1]} : vector<2x1x32xf32> to vector<1x1x32xf32>
    %250 = vector.shape_cast %249 : vector<1x1x32xf32> to vector<1x32xf32>
    %251 = vector.extract_strided_slice %19 {offsets = [1, 0, 0], sizes = [1, 1, 32], strides = [1, 1, 1]} : vector<2x1x32xf32> to vector<1x1x32xf32>
    %252 = vector.shape_cast %251 : vector<1x1x32xf32> to vector<1x32xf32>
    %cst_90 = arith.constant dense<0.000000e+00> : vector<32xf32>
    %253 = vector.multi_reduction <add>, %248, %cst_90 [1] : vector<32x32xf32> to vector<32xf32>
    %254 = vector.shape_cast %253 : vector<32xf32> to vector<32x1xf32>
    %cst_91 = arith.constant 3.200000e+01 : f32
    %255 = vector.broadcast %cst_91 : f32 to vector<32x1xf32>
    %256 = arith.divf %254, %255 : vector<32x1xf32>
    %257 = vector.broadcast %256 : vector<32x1xf32> to vector<32x32xf32>
    %258 = arith.subf %248, %257 : vector<32x32xf32>
    %259 = arith.mulf %258, %258 : vector<32x32xf32>
    %cst_92 = arith.constant dense<0.000000e+00> : vector<32xf32>
    %260 = vector.multi_reduction <add>, %259, %cst_92 [1] : vector<32x32xf32> to vector<32xf32>
    %261 = vector.shape_cast %260 : vector<32xf32> to vector<32x1xf32>
    %cst_93 = arith.constant 3.200000e+01 : f32
    %262 = vector.broadcast %cst_93 : f32 to vector<32x1xf32>
    %263 = arith.divf %261, %262 : vector<32x1xf32>
    %264 = vector.broadcast %256 : vector<32x1xf32> to vector<32x32xf32>
    %265 = arith.subf %248, %264 : vector<32x32xf32>
    %cst_94 = arith.constant 9.99999974E-6 : f32
    %266 = vector.broadcast %cst_94 : f32 to vector<32x1xf32>
    %267 = arith.addf %263, %266 : vector<32x1xf32>
    %268 = math.rsqrt %267 : vector<32x1xf32>
    %269 = vector.broadcast %268 : vector<32x1xf32> to vector<32x32xf32>
    %270 = arith.mulf %265, %269 : vector<32x32xf32>
    %271 = vector.broadcast %250 : vector<1x32xf32> to vector<32x32xf32>
    %272 = arith.mulf %270, %271 : vector<32x32xf32>
    %273 = vector.broadcast %252 : vector<1x32xf32> to vector<32x32xf32>
    %274 = arith.addf %272, %273 : vector<32x32xf32>
    %275 = vector.extract_strided_slice %20 {offsets = [1, 0, 0], sizes = [1, 32, 64], strides = [1, 1, 1]} : vector<2x32x64xf32> to vector<1x32x64xf32>
    %276 = vector.shape_cast %275 : vector<1x32x64xf32> to vector<32x64xf32>
    %cst_95 = arith.constant dense<0.000000e+00> : vector<32x64xf32>
    %277 = tpu.matmul %274, %276, %cst_95 {dimension_numbers = #tpu.dot_dimension_numbers<[1], [0], [0], [1], [0, 0, 1, 1], [], []>} : vector<32x32xf32>, vector<32x64xf32>, vector<32x64xf32> -> vector<32x64xf32>
    %278 = vector.extract_strided_slice %21 {offsets = [1, 0, 0], sizes = [1, 1, 64], strides = [1, 1, 1]} : vector<2x1x64xf32> to vector<1x1x64xf32>
    %279 = vector.shape_cast %278 : vector<1x1x64xf32> to vector<1x64xf32>
    %280 = vector.broadcast %279 : vector<1x64xf32> to vector<32x64xf32>
    %281 = arith.addf %277, %280 : vector<32x64xf32>
    %282 = arith.mulf %281, %281 : vector<32x64xf32>
    %283 = arith.mulf %281, %282 : vector<32x64xf32>
    %cst_96 = arith.constant 4.471500e-02 : f32
    %284 = vector.broadcast %cst_96 : f32 to vector<32x64xf32>
    %285 = arith.mulf %284, %283 : vector<32x64xf32>
    %286 = arith.addf %281, %285 : vector<32x64xf32>
    %cst_97 = arith.constant 0.797884583 : f32
    %287 = vector.broadcast %cst_97 : f32 to vector<32x64xf32>
    %288 = arith.mulf %287, %286 : vector<32x64xf32>
    %289 = math.tanh %288 : vector<32x64xf32>
    %cst_98 = arith.constant 1.000000e+00 : f32
    %290 = vector.broadcast %cst_98 : f32 to vector<32x64xf32>
    %291 = arith.addf %290, %289 : vector<32x64xf32>
    %cst_99 = arith.constant 5.000000e-01 : f32
    %292 = vector.broadcast %cst_99 : f32 to vector<32x64xf32>
    %293 = arith.mulf %292, %291 : vector<32x64xf32>
    %294 = arith.mulf %281, %293 : vector<32x64xf32>
    %295 = vector.extract_strided_slice %22 {offsets = [1, 0, 0], sizes = [1, 64, 32], strides = [1, 1, 1]} : vector<2x64x32xf32> to vector<1x64x32xf32>
    %296 = vector.shape_cast %295 : vector<1x64x32xf32> to vector<64x32xf32>
    %cst_100 = arith.constant dense<0.000000e+00> : vector<32x32xf32>
    %297 = tpu.matmul %294, %296, %cst_100 {dimension_numbers = #tpu.dot_dimension_numbers<[1], [0], [0], [1], [0, 0, 1, 1], [], []>} : vector<32x64xf32>, vector<64x32xf32>, vector<32x32xf32> -> vector<32x32xf32>
    %298 = arith.addf %248, %297 : vector<32x32xf32>
    %299 = vector.extract_strided_slice %23 {offsets = [1, 0, 0], sizes = [1, 1, 32], strides = [1, 1, 1]} : vector<2x1x32xf32> to vector<1x1x32xf32>
    %300 = vector.shape_cast %299 : vector<1x1x32xf32> to vector<1x32xf32>
    %301 = vector.broadcast %300 : vector<1x32xf32> to vector<32x32xf32>
    %302 = arith.addf %298, %301 : vector<32x32xf32>
    %303 = vector.shape_cast %302 : vector<32x32xf32> to vector<2x16x32xf32>
    %304 = vector.extract_strided_slice %303 {offsets = [0, 0, 0], sizes = [2, 8, 32], strides = [1, 1, 1]} : vector<2x16x32xf32> to vector<2x8x32xf32>
    %305 = vector.shape_cast %304 : vector<2x8x32xf32> to vector<16x32xf32>
    %c0_101 = arith.constant 0 : index
    %c0_102 = arith.constant 0 : index
    %306 = vector.load %arg16[%c0_101, %c0_102] : memref<16x32xf32, #tpu.memory_space<vmem>>, vector<16x32xf32>
    tpu.vector_store %arg16[%c0_101, %c0_102], %305 {strides = array<i32>} : memref<16x32xf32, #tpu.memory_space<vmem>>, vector<16x32xf32>,
    return
  }
  func.func @transform_0(%arg0: i32) -> (i32, i32, i32) {
    %c0_i32 = arith.constant 0 : i32
    %c0_i32_0 = arith.constant 0 : i32
    %c0_i32_1 = arith.constant 0 : i32
    return %arg0, %c0_i32, %c0_i32_0 : i32, i32, i32
  }
  func.func @transform_1(%arg0: i32) -> (i32, i32) {
    %c0_i32 = arith.constant 0 : i32
    %c0_i32_0 = arith.constant 0 : i32
    %c0_i32_1 = arith.constant 0 : i32
    return %c0_i32, %c0_i32_0 : i32, i32
  }
  func.func @transform_2(%arg0: i32) -> (i32, i32, i32) {
    %c0_i32 = arith.constant 0 : i32
    %c0_i32_0 = arith.constant 0 : i32
    %c0_i32_1 = arith.constant 0 : i32
    %c0_i32_2 = arith.constant 0 : i32
    return %c0_i32, %c0_i32_0, %c0_i32_1 : i32, i32, i32
  }
  func.func @transform_3(%arg0: i32) -> (i32, i32, i32) {
    %c0_i32 = arith.constant 0 : i32
    %c0_i32_0 = arith.constant 0 : i32
    %c0_i32_1 = arith.constant 0 : i32
    %c0_i32_2 = arith.constant 0 : i32
    return %c0_i32, %c0_i32_0, %c0_i32_1 : i32, i32, i32
  }
  func.func @transform_4(%arg0: i32) -> (i32, i32, i32) {
    %c0_i32 = arith.constant 0 : i32
    %c0_i32_0 = arith.constant 0 : i32
    %c0_i32_1 = arith.constant 0 : i32
    %c0_i32_2 = arith.constant 0 : i32
    return %c0_i32, %c0_i32_0, %c0_i32_1 : i32, i32, i32
  }
  func.func @transform_5(%arg0: i32) -> (i32, i32, i32) {
    %c0_i32 = arith.constant 0 : i32
    %c0_i32_0 = arith.constant 0 : i32
    %c0_i32_1 = arith.constant 0 : i32
    %c0_i32_2 = arith.constant 0 : i32
    return %c0_i32, %c0_i32_0, %c0_i32_1 : i32, i32, i32
  }
  func.func @transform_6(%arg0: i32) -> (i32, i32, i32) {
    %c0_i32 = arith.constant 0 : i32
    %c0_i32_0 = arith.constant 0 : i32
    %c0_i32_1 = arith.constant 0 : i32
    %c0_i32_2 = arith.constant 0 : i32
    return %c0_i32, %c0_i32_0, %c0_i32_1 : i32, i32, i32
  }
  func.func @transform_7(%arg0: i32) -> (i32, i32, i32) {
    %c0_i32 = arith.constant 0 : i32
    %c0_i32_0 = arith.constant 0 : i32
    %c0_i32_1 = arith.constant 0 : i32
    %c0_i32_2 = arith.constant 0 : i32
    return %c0_i32, %c0_i32_0, %c0_i32_1 : i32, i32, i32
  }
  func.func @transform_8(%arg0: i32) -> (i32, i32, i32) {
    %c0_i32 = arith.constant 0 : i32
    %c0_i32_0 = arith.constant 0 : i32
    %c0_i32_1 = arith.constant 0 : i32
    %c0_i32_2 = arith.constant 0 : i32
    return %c0_i32, %c0_i32_0, %c0_i32_1 : i32, i32, i32
  }
  func.func @transform_9(%arg0: i32) -> (i32, i32, i32) {
    %c0_i32 = arith.constant 0 : i32
    %c0_i32_0 = arith.constant 0 : i32
    %c0_i32_1 = arith.constant 0 : i32
    %c0_i32_2 = arith.constant 0 : i32
    return %c0_i32, %c0_i32_0, %c0_i32_1 : i32, i32, i32
  }
  func.func @transform_10(%arg0: i32) -> (i32, i32, i32) {
    %c0_i32 = arith.constant 0 : i32
    %c0_i32_0 = arith.constant 0 : i32
    %c0_i32_1 = arith.constant 0 : i32
    %c0_i32_2 = arith.constant 0 : i32
    return %c0_i32, %c0_i32_0, %c0_i32_1 : i32, i32, i32
  }
  func.func @transform_11(%arg0: i32) -> (i32, i32, i32) {
    %c0_i32 = arith.constant 0 : i32
    %c0_i32_0 = arith.constant 0 : i32
    %c0_i32_1 = arith.constant 0 : i32
    %c0_i32_2 = arith.constant 0 : i32
    return %c0_i32, %c0_i32_0, %c0_i32_1 : i32, i32, i32
  }
  func.func @transform_12(%arg0: i32) -> (i32, i32, i32) {
    %c0_i32 = arith.constant 0 : i32
    %c0_i32_0 = arith.constant 0 : i32
    %c0_i32_1 = arith.constant 0 : i32
    %c0_i32_2 = arith.constant 0 : i32
    return %c0_i32, %c0_i32_0, %c0_i32_1 : i32, i32, i32
  }
  func.func @transform_13(%arg0: i32) -> (i32, i32, i32) {
    %c0_i32 = arith.constant 0 : i32
    %c0_i32_0 = arith.constant 0 : i32
    %c0_i32_1 = arith.constant 0 : i32
    %c0_i32_2 = arith.constant 0 : i32
    return %c0_i32, %c0_i32_0, %c0_i32_1 : i32, i32, i32
  }
  func.func @transform_14(%arg0: i32) -> (i32, i32, i32) {
    %c0_i32 = arith.constant 0 : i32
    %c0_i32_0 = arith.constant 0 : i32
    %c0_i32_1 = arith.constant 0 : i32
    %c0_i32_2 = arith.constant 0 : i32
    return %c0_i32, %c0_i32_0, %c0_i32_1 : i32, i32, i32
  }
  func.func @transform_15(%arg0: i32) -> (i32, i32) {
    %c0_i32 = arith.constant 0 : i32
    %c0_i32_0 = arith.constant 0 : i32
    return %arg0, %c0_i32 : i32, i32
  }
}

</mosaic_0001>

<bundles_post_ra>
// kernel: tpu_custom_call.1
= control target key start
LH: loop header
LB: loop body
LE: loop exit
PB: predicated region body
PF: predicated region fallthrough
CT: control target
= control target key end

     0   :  { %s4765_s0 = inlined_call_operand.vmem [shape: f32[2,8,256], index: 0, kind: input, shape index: {}]   ;;  %s4766_s1 = inlined_call_operand.vmem [shape: f32[256,32], index: 1, kind: input, shape index: {}]   ;;  %s4767_s2 = inlined_call_operand.vmem [shape: f32[1,8,32], index: 2, kind: input, shape index: {}]   ;;  %s4768_s3 = inlined_call_operand.vmem [shape: f32[1,8,32], index: 3, kind: input, shape index: {}]   ;;  %s4769_s4 = inlined_call_operand.vmem [shape: f32[2,1,32], index: 4, kind: input, shape index: {}]   ;;  %s4770_s5 = inlined_call_operand.vmem [shape: f32[2,1,32], index: 5, kind: input, shape index: {}]   ;;  %s4771_s6 = inlined_call_operand.vmem [shape: f32[2,32,96], index: 6, kind: input, shape index: {}]   ;;  %s4772_s7 = inlined_call_operand.vmem [shape: f32[2,32,32], index: 7, kind: input, shape index: {}]   ;;  %s4773_s8 = inlined_call_operand.vmem [shape: f32[2,1,32], index: 8, kind: input, shape index: {}]   ;;  %s4774_s9 = inlined_call_operand.vmem [shape: f32[2,1,32], index: 9, kind: input, shape index: {}]   ;;  %s4775_s10 = inlined_call_operand.vmem [shape: f32[2,1,32], index: 10, kind: input, shape index: {}]   ;;  %s4776_s11 = inlined_call_operand.vmem [shape: f32[2,32,64], index: 11, kind: input, shape index: {}]   ;;  %s4777_s12 = inlined_call_operand.vmem [shape: f32[2,1,64], index: 12, kind: input, shape index: {}]   ;;  %s4778_s13 = inlined_call_operand.vmem [shape: f32[2,64,32], index: 13, kind: input, shape index: {}]   ;;  %s4779_s14 = inlined_call_operand.vmem [shape: f32[2,1,32], index: 14, kind: input, shape index: {}]   ;;  %s4780_s15 = inlined_call_operand.hbm [shape: f32[16,32], index: 15, kind: output, shape index: {}]  }
   0x1   :  { %v71_v0 = vld [vmem:[%s4766_s1 + $0x80] sm:$0xff]  ;;  %v72_v1 = vld [vmem:[%s4766_s1 + $0x88] sm:$0xff]  ;;  %v73_v5 = vld [vmem:[%s4766_s1 + $0x90] sm:$0xff] }
   0x2   :  { %v55_v2 = vld [vmem:[%s4766_s1] sm:$0xff]  ;;  %v3598_v3 = vpack.c.bf16 %v72_v1, %v71_v0  ;;  %v56_v4 = vld [vmem:[%s4766_s1 + $0x8] sm:$0xff]  ;;  %v74_v6 = vld [vmem:[%s4766_s1 + $0x98] sm:$0xff] }
   0x3   :  { %v3600_v7 = vpack.c.bf16 %v56_v4, %v55_v2  ;;  %v3602_v8 = vpack.c.bf16 %v74_v6, %v73_v5  ;;  %v57_v9 = vld [vmem:[%s4766_s1 + $0x10] sm:$0xff]  ;;  %v58_v10 = vld [vmem:[%s4766_s1 + $0x18] sm:$0xff]  ;;  %v75_v11 = vld [vmem:[%s4766_s1 + $0xa0] sm:$0xff] }
   0x4   :  { %3599 = vmatprep.subr.bf16.mxu0 %v3598_v3  ;;  %v76_v12 = vld [vmem:[%s4766_s1 + $0xa8] sm:$0xff]  ;;  %v3604_v13 = vpack.c.bf16 %v58_v10, %v57_v9  ;;  %v59_v15 = vld [vmem:[%s4766_s1 + $0x20] sm:$0xff]  ;;  %v77_v17 = vld [vmem:[%s4766_s1 + $0xb0] sm:$0xff] }
   0x5   :  { %3601 = vmatpush3.bf16.msra.mxu0 %v3600_v7  ;;  %v3606_v14 = vpack.c.bf16 %v76_v12, %v75_v11  ;;  %v60_v16 = vld [vmem:[%s4766_s1 + $0x28] sm:$0xff]  ;;  %v78_v18 = vld [vmem:[%s4766_s1 + $0xb8] sm:$0xff]  ;;  %v61_v21 = vld [vmem:[%s4766_s1 + $0x30] sm:$0xff] }
   0x6   :  { %3603 = vmatprep.subr.bf16.mxu0 %v3602_v8  ;;  %v3608_v19 = vpack.c.bf16 %v60_v16, %v59_v15  ;;  %v3610_v20 = vpack.c.bf16 %v78_v18, %v77_v17  ;;  %v62_v22 = vld [vmem:[%s4766_s1 + $0x38] sm:$0xff]  ;;  %v79_v23 = vld [vmem:[%s4766_s1 + $0xc0] sm:$0xff]  ;;  %v80_v24 = vld [vmem:[%s4766_s1 + $0xc8] sm:$0xff] }
   0x7   :  { %v52_v25 = vld [vmem:[%s4765_s0 + $0x8] sm:$0xff]  ;;  %v3612_v26 = vpack.c.bf16 %v62_v22, %v61_v21 }
   0x8   :  { %151 = vmatprep.mubr.f32.mxu0 %v52_v25 }
   0x9   :  { %3605 = vmatpush3.bf16.msra.mxu0 %v3604_v13 }
   0xa   :  { %3607 = vmatprep.subr.bf16.mxu0 %v3606_v14 }
   0xd   :  { %3609 = vmatpush3.bf16.msra.mxu0 %v3608_v19 }
   0xe   :  { %20 = vsyncpa [#allocation3], 0  ;;  %3611 = vmatprep.subr.bf16.mxu0 %v3610_v20  ;;  %v3614_v27 = vpack.c.bf16 %v80_v24, %v79_v23  ;;  %v63_v28 = vld [vmem:[%s4766_s1 + $0x40] sm:$0xff]  ;;  %v64_v29 = vld [vmem:[%s4766_s1 + $0x48] sm:$0xff]  ;;  %vm224_vm0 = vcmask 261120   ;;  %vm383_vm1 = vcmask 130048  }
   0xf   :  { %v81_v30 = vld [vmem:[%s4766_s1 + $0xd0] sm:$0xff]  ;;  %v82_v31 = vld [vmem:[%s4766_s1 + $0xd8] sm:$0xff]  ;;  %v3616_v32 = vpack.c.bf16 %v64_v29, %v63_v28  ;;  %v83_v36 = vld [vmem:[%s4766_s1 + $0xe0] sm:$0xff]  ;;  %s4014_s27 = smov 96   ;;  %s4016_s28 = smov 64   ;;  %vm1532_vm4 = vcmask 523264  }
  0x10   :  { %v3618_v33 = vpack.c.bf16 %v82_v31, %v81_v30  ;;  %v65_v34 = vld [vmem:[%s4766_s1 + $0x50] sm:$0xff]  ;;  %v66_v35 = vld [vmem:[%s4766_s1 + $0x58] sm:$0xff]  ;;  %v84_v37 = vld [vmem:[%s4766_s1 + $0xe8] sm:$0xff]  ;;  %s4017_s29 = smov 80   ;;  %s4019_s30 = smov 48  }
  0x11   :  { %3613 = vmatpush3.bf16.msra.mxu0 %v3612_v26  ;;  %v3620_v38 = vpack.c.bf16 %v66_v35, %v65_v34  ;;  %v3622_v39 = vpack.c.bf16 %v84_v37, %v83_v36  ;;  %v67_v40 = vld [vmem:[%s4766_s1 + $0x60] sm:$0xff]  ;;  %v68_v41 = vld [vmem:[%s4766_s1 + $0x68] sm:$0xff]  ;;  %v85_v42 = vld [vmem:[%s4766_s1 + $0xf0] sm:$0xff]  ;;  %s4020_s21 = smov 16  }
  0x12   :  { %3615 = vmatprep.subr.bf16.mxu0 %v3614_v27  ;;  %v86_v43 = vld [vmem:[%s4766_s1 + $0xf8] sm:$0xff]  ;;  %v3624_v44 = vpack.c.bf16 %v68_v41, %v67_v40  ;;  %v69_v46 = vld [vmem:[%s4766_s1 + $0x70] sm:$0xff]  ;;  %v51_v49 = vld [vmem:[%s4765_s0] sm:$0xff] }
  0x13   :  { %v3626_v45 = vpack.c.bf16 %v86_v43, %v85_v42  ;;  %v70_v47 = vld [vmem:[%s4766_s1 + $0x78] sm:$0xff]  ;;  %v53_v51 = vld [vmem:[%s4765_s0 + $0x10] sm:$0xff]  ;;  %v162_v54 = vld [vmem:[%s4767_s2] sm:$0xff]  ;;  %s4018_s1 = smov 112  }
  0x14   :  { %v3628_v48 = vpack.c.bf16 %v70_v47, %v69_v46  ;;  %v54_v50 = vld [vmem:[%s4765_s0 + $0x18] sm:$0xff]  ;;  %v4220_v59 = vld [vmem:[%s4768_s3] sm:$0xff]  ;;  %v171_v17 = vld [vmem:[%s4771_s6 + $0x8] sm:$0xff]  ;;  %s4021_s3 = smov [#allocation2]  }
  0x15   :  { %3617 = vmatpush3.bf16.msra.mxu0 %v3616_v32  ;;  %v228_v63 = vsel %vm224_vm0, %v4220_v59, 0.0  ;;  %v170_v16 = vld [vmem:[%s4771_s6] sm:$0xff]  ;;  %v172_v18 = vld [vmem:[%s4771_s6 + $0x10] sm:$0xff]  ;;  %v173_v20 = vld [vmem:[%s4771_s6 + $0x18] sm:$0xff]  ;;  %s3079_s18 = sshll.u32 %s4021_s3, 4  ;;  %s3080_s18 = int_to_ptr.vmem [resolvable:$true] %s3079_s18 }
  0x16   :  { %3619 = vmatprep.subr.bf16.mxu0 %v3618_v33  ;;  %v3630_v19 = vpack.c.bf16 %v171_v17, %v170_v16  ;;  %v3634_v21 = vpack.c.bf16 %v173_v20, %v172_v18  ;;  %v3090_v32 = vld [vmem:[%s4769_s4] ss:$0 sm:$0xff]  ;;  %vm4278_vm2 = vmpackc.low %vm383_vm1, %vm383_vm1  ;;  %s3990_s19 = scalar_lea.vmem %s3080_s18, 256  ;;  %p3995_p1 = scmp.lt.s32.totalorder %s3080_s18, %s3080_s18 }
  0x17   :  { %v3091_v34 = vld [vmem:[%s4770_s5] ss:$0 sm:$0xff]  ;;  %p3991_p0 = scmp.ne.s32.totalorder %s3080_s18, %s3990_s19  ;;  %p3996_p2 = scmp.lt.s32.totalorder %s3990_s19, %s3990_s19 }
  0x18   :  { %3631 = vmatprep.subr.bf16.mxu1 %v3630_v19 }
  0x19   :  { %3621 = vmatpush3.bf16.msra.mxu0 %v3620_v38  ;;  %3633 = vmatpush3.bf16.msra.mxu1 %v3630_v19  ;;  %p3997_p3 = por %p3996_p2, %p3995_p1 }
  0x1a   :  { %3623 = vmatprep.subr.bf16.mxu0 %v3622_v39  ;;  %3635 = vmatprep.subr.bf16.mxu1 %v3634_v21 }
  0x1b   :  { %p3998_p4 = pnand %p3997_p3, %p3991_p0 }
  0x1d   :  { %3625 = vmatpush3.bf16.msra.mxu0 %v3624_v44  ;;  %3637 = vmatpush3.bf16.msra.mxu1 %v3634_v21 }
  0x1e   :  { %3627 = vmatprep.subr.bf16.mxu0 %v3626_v45 }
  0x21   :  { %3629 = vmatpush3.bf16.msra.mxu0 %v3628_v48 }
  0x24   :  { %152 = vmatmul.mubr.f32.vlgmr.msra.gmra.mrb[0].mxu0 %v51_v49 }
  0x25   :  { %156 = vmatprep.mubr.f32.mxu0 %v54_v50 }
  0x28   :  { %157 = vmatmul.mubr.f32.gmra.mrb[2].mxu0 %v53_v51 }
  0xf7   :  { %v3216_v52 = vpop.f32.mrb[0].mxu0 }
  0xf8   :  { %v3217_v53 = vpop.f32.mrb[1].mxu0 }
  0xf9   :  { %v3218_v55 = vadd.f32 %v3217_v53, %v3216_v52 }
  0xfb   :  { %v4215_v56 = vadd.f32 %v3218_v55, %v162_v54  ;;  %v3219_v57 = vpop.f32.mrb[2].mxu0 }
  0xfc   :  { %v3220_v58 = vpop.f32.mrb[3].mxu0 }
  0xfd   :  { %v3221_v60 = vadd.f32 %v3220_v58, %v3219_v57  ;;  %v225_v61 = vsel %vm224_vm0, %v4215_v56, 0.0 }
  0xfe   :  { %226 = vadd.xlane.f32.xlu0 %v225_v61 }
  0xff   :  { %v4224_v62 = vadd.f32 %v3221_v60, %v162_v54 }
 0x101   :  { %v231_v0 = vsel %vm224_vm0, %v4224_v62, 0.0 }
 0x102   :  { %232 = vadd.xlane.f32.xlu1 %v231_v0  ;;  %229 = vadd.xlane.f32.xlu0 %v228_v63  ;;  %v220_v63 = vlaneseq }
 0x104   :  { %v221_v0 = vand.u32 127, %v220_v63 }
 0x106   :  { %vm222_vm3 = vcmp.ge.s32.totalorder %v221_v0, 9 }
 0x18b   :  { %v227_v1 = vpop.xlane.xlu0 %226 }
 0x18c   :  { %v235_v2 = vmul.f32 0.03125, %v227_v1 }
 0x18e   :  { %v238_v3 = vsub.f32 %v4215_v56, %v235_v2  ;;  %v4015_v2 = vmov 0.0  }
 0x18f   :  { %v233_v4 = vpop.xlane.xlu1 %232  ;;  %v230_v5 = vpop.xlane.xlu0 %229 }
 0x190   :  { %v237_v6 = vmul.f32 0.03125, %v233_v4  ;;  %v236_v7 = vmul.f32 0.03125, %v230_v5  ;;  %v241_v8 = vmul.f32 %v238_v3, %v238_v3 }
 0x192   :  { %v240_v9 = vsub.f32 %v4224_v62, %v237_v6  ;;  %v239_v10 = vsub.f32 %v4220_v59, %v236_v7  ;;  %v244_v11 = vsel %vm224_vm0, %v241_v8, 0.0 }
 0x193   :  { %245 = vadd.xlane.f32.xlu1 %v244_v11 }
 0x194   :  { %v243_v12 = vmul.f32 %v240_v9, %v240_v9  ;;  %v242_v13 = vmul.f32 %v239_v10, %v239_v10 }
 0x196   :  { %v250_v14 = vsel %vm224_vm0, %v243_v12, 0.0  ;;  %v247_v15 = vsel %vm224_vm0, %v242_v13, 0.0 }
 0x197   :  { %251 = vadd.xlane.f32.xlu1 %v250_v14  ;;  %248 = vadd.xlane.f32.xlu0 %v247_v15 }
 0x220   :  { %v246_v22 = vpop.xlane.xlu1 %245 }
 0x221   :  { %v253_v23 = vmul.f32 0.03125, %v246_v22 }
 0x223   :  { %v256_v24 = vadd.f32 1e-05, %v253_v23 }
 0x224   :  { %v252_v25 = vpop.xlane.xlu1 %251  ;;  %v249_v26 = vpop.xlane.xlu0 %248 }
 0x225   :  { %3880 = vrsqrt.f32 %v256_v24  ;;  %v255_v27 = vmul.f32 0.03125, %v252_v25  ;;  %v254_v28 = vmul.f32 0.03125, %v249_v26 }
 0x227   :  { %v258_v29 = vadd.f32 1e-05, %v255_v27  ;;  %v257_v30 = vadd.f32 1e-05, %v254_v28 }
 0x229   :  { %3882 = vrsqrt.f32 %v258_v29 }
 0x22a   :  { %3884 = vrsqrt.f32 %v257_v30 }
 0x22f   :  { %v3881_v31 = vpop.eup %3880 }
 0x230   :  { %v262_v33 = vmul.f32 %v3881_v31, %v238_v3  ;;  %v4296_v3 = vsel %vm222_vm3, -1e+30, %v4015_v2 }
 0x232   :  { %v271_v35 = vmul.f32 %v3090_v32, %v262_v33 }
 0x233   :  { %v3883_v36 = vpop.eup %3882 }
 0x234   :  { %v3885_v37 = vpop.eup %3884  ;;  %v264_v38 = vmul.f32 %v3883_v36, %v240_v9  ;;  %v280_v39 = vadd.f32 %v3091_v34, %v271_v35 }
 0x235   :  { %v263_v40 = vmul.f32 %v3885_v37, %v239_v10 }
 0x236   :  { %v273_v41 = vmul.f32 %v3090_v32, %v264_v38  ;;  %3366 = vmatprep.mubr.msk.f32.mxu1 %vm224_vm0, %v280_v39 }
 0x237   :  { %v272_v42 = vmul.f32 %v3090_v32, %v263_v40 }
 0x238   :  { %v282_v43 = vadd.f32 %v3091_v34, %v273_v41 }
 0x239   :  { %v281_v44 = vadd.f32 %v3091_v34, %v272_v42 }
 0x23b   :  { %3367 = vmatmul.mubr.msk.f32.vlgmr.msra.gmra.mrb[0].mxu1 %vm224_vm0, %v281_v44 }
 0x23c   :  { %3369 = vmatprep.mubr.msk.f32.mxu1 %vm224_vm0, %v282_v43 }
 0x23f   :  { %3370 = vmatmul.mubr.msk.f32.gmra.mrb[2].mxu1 %vm224_vm0, %v281_v44 }
 0x30e   :  { %v4258_v45 = vpop.f32.mrb[0].mxu1 }
 0x30f   :  { %v358_v46 = vpop.f32.mrb[1].mxu1 }
 0x310   :  { %3376 = vmatprep.mubr.msk.f32.mxu1 %vm383_vm1, %v358_v46  ;;  %v4262_v47 = vpack.i.bf16 %v4258_v45, %v358_v46 }
 0x312   :  { %3801 = vrot.lane.b32.xlu0 %v4262_v47, %s4014_s27  ;;  %v4266_v48 = vpop.f32.mrb[2].mxu1 }
 0x313   :  { %v4268_v49 = vpop.f32.mrb[3].mxu1 }
 0x314   :  { %v4272_v50 = vpack.i.bf16 %v4266_v48, %v4268_v49 }
 0x316   :  { %3806 = vrot.lane.b32.xlu1 %v4272_v50, %s4014_s27 }
 0x384   :  { %v3802_v51 = vpop.permute.xlu0 %3801 }
 0x385   :  { %v3804_v52 = vunpack.i.h.bf16 %v3802_v51  ;;  %v3803_v53 = vunpack.i.l.bf16 %v3802_v51 }
 0x387   :  { %v3638_v55 = vpack.c.bf16 %v3804_v52, %v3803_v53 }
 0x388   :  { %v3807_v57 = vpop.permute.xlu1 %3806 }
 0x389   :  { %v3809_v58 = vunpack.i.h.bf16 %v3807_v57  ;;  %v3808_v60 = vunpack.i.l.bf16 %v3807_v57  ;;  %3640 = vmatprep.subr.msk.bf16.mxu1 %vm4278_vm2, %v3638_v55 }
 0x38a   :  { %3643 = vmatpush3.bf16.xpose.msk.msra.mxu1 %vm4278_vm2, %v3638_v55 }
 0x38b   :  { %v3644_v61 = vpack.c.bf16 %v3809_v58, %v3808_v60 }
 0x38d   :  { %3646 = vmatprep.subr.msk.bf16.mxu1 %vm4278_vm2, %v3644_v61 }
 0x391   :  { %3377 = vmatmul.mubr.msk.f32.vlgmr.msra.gmra.mrb[4].mxu1 %vm383_vm1, %v4258_v45 }
 0x392   :  { %3649 = vmatpush3.bf16.xpose.msk.msra.mxu1 %vm4278_vm2, %v3644_v61  ;;  %3383 = vmatprep.mubr.msk.f32.mxu1 %vm383_vm1, %v4268_v49 }
 0x399   :  { %3384 = vmatmul.mubr.msk.f32.vlgmr.msra.gmra.mrb[6].mxu1 %vm383_vm1, %v4266_v48 }
 0x464   :  { %v3378_v1 = vpop.f32.mrb[4].mxu1 }
 0x465   :  { %v557_v4 = vmul.f32 0.25, %v3378_v1  ;;  %v458_v5 = vpop.f32.mrb[5].mxu1 }
 0x466   :  { %v556_v6 = vmul.f32 0.25, %v458_v5 }
 0x467   :  { %v561_v7 = vadd.f32 %v557_v4, %v4296_v3 }
 0x468   :  { %v560_v8 = vadd.f32 %v556_v6, %v4296_v3 }
 0x469   :  { %v567_v9 = vsel %vm383_vm1, %v561_v7, -inf }
 0x46a   :  { %568 = vmax.xlane.f32.xlu0 %v567_v9  ;;  %v564_v10 = vsel %vm383_vm1, %v560_v8, -inf }
 0x46b   :  { %565 = vmax.xlane.f32.xlu1 %v564_v10 }
 0x46c   :  { %v3385_v11 = vpop.f32.mrb[6].mxu1 }
 0x46d   :  { %v559_v12 = vmul.f32 0.25, %v3385_v11  ;;  %v547_v13 = vpop.f32.mrb[7].mxu1 }
 0x46e   :  { %v558_v14 = vmul.f32 0.25, %v547_v13 }
 0x46f   :  { %v563_v15 = vadd.f32 %v559_v12, %v4296_v3 }
 0x470   :  { %v562_v16 = vadd.f32 %v558_v14, %v4296_v3 }
 0x471   :  { %v573_v17 = vsel %vm383_vm1, %v563_v15, -inf }
 0x472   :  { %574 = vmax.xlane.f32.xlu1 %v573_v17  ;;  %v570_v18 = vsel %vm383_vm1, %v562_v16, -inf }
 0x473   :  { %571 = vmax.xlane.f32.xlu0 %v570_v18 }
 0x483   :  { %3816 = vrot.lane.b32.xlu1 %v4272_v50, %s4016_s28 }
 0x487   :  { %3821 = vrot.lane.b32.xlu1 %v4262_v47, %s4017_s29 }
 0x489   :  { %3811 = vrot.lane.b32.xlu0 %v4262_v47, %s4016_s28 }
 0x48b   :  { %782 = vrot.lane.b32.xlu1 %v358_v46, %s4018_s1 }
 0x4f7   :  { %v569_v19 = vpop.xlane.xlu0 %568 }
 0x4f8   :  { %v577_v20 = vsub.f32 %v561_v7, %v569_v19  ;;  %v566_v21 = vpop.xlane.xlu1 %565 }
 0x4f9   :  { %v576_v22 = vsub.f32 %v560_v8, %v566_v21 }
 0x4fa   :  { %v582_v23 = vmul.f32 1.442695, %v577_v20 }
 0x4fb   :  { %v580_v24 = vmul.f32 1.442695, %v576_v22 }
 0x4fc   :  { %3886 = vpow2.f32 %v582_v23 }
 0x4fd   :  { %3888 = vpow2.f32 %v580_v24 }
 0x4ff   :  { %v575_v25 = vpop.xlane.xlu1 %574 }
 0x500   :  { %v579_v26 = vsub.f32 %v563_v15, %v575_v25  ;;  %v572_v27 = vpop.xlane.xlu0 %571 }
 0x501   :  { %v578_v28 = vsub.f32 %v562_v16, %v572_v27 }
 0x502   :  { %v586_v29 = vmul.f32 1.442695, %v579_v26 }
 0x503   :  { %v584_v30 = vmul.f32 1.442695, %v578_v28  ;;  %v3817_v31 = vpop.permute.xlu1 %3816 }
 0x504   :  { %3890 = vpow2.f32 %v586_v29  ;;  %v3819_v32 = vunpack.i.h.bf16 %v3817_v31  ;;  %v3812_v33 = vpop.permute.xlu0 %3811  ;;  %v3818_v34 = vunpack.i.l.bf16 %v3817_v31 }
 0x505   :  { %3892 = vpow2.f32 %v584_v30  ;;  %v3814_v35 = vunpack.i.h.bf16 %v3812_v33  ;;  %v3813_v36 = vunpack.i.l.bf16 %v3812_v33 }
 0x506   :  { %v3887_v37 = vpop.eup %3886  ;;  %v3654_v46 = vpack.c.bf16 %v3819_v32, %v3818_v34 }
 0x507   :  { %v3889_v38 = vpop.eup %3888  ;;  %v3650_v39 = vpack.c.bf16 %v3814_v35, %v3813_v36  ;;  %v3822_v40 = vpop.permute.xlu1 %3821  ;;  %v591_v41 = vsel %vm383_vm1, %v3887_v37, 0.0 }
 0x508   :  { %v3824_v42 = vunpack.i.h.bf16 %v3822_v40  ;;  %v3823_v43 = vunpack.i.l.bf16 %v3822_v40  ;;  %592 = vadd.xlane.f32.xlu1 %v591_v41  ;;  %v588_v44 = vsel %vm383_vm1, %v3889_v38, 0.0 }
 0x509   :  { %589 = vadd.xlane.f32.xlu0 %v588_v44  ;;  %3651 = vmatprep.subr.bf16.mxu1 %v3650_v39 }
 0x50a   :  { %v3658_v51 = vpack.c.bf16 %v3824_v42, %v3823_v43  ;;  %3653 = vmatpush3.bf16.msra.mxu1 %v3650_v39 }
 0x50b   :  { %v783_v52 = vpop.permute.xlu1 %782  ;;  %3655 = vmatprep.subr.bf16.mxu1 %v3654_v46 }
 0x50c   :  { %3660 = vmatprep.subr.msk.bf16.mxu0 %vm4278_vm2, %v3658_v51  ;;  %3404 = vmatprep.mubr.msk.f32.mxu0 %vm383_vm1, %v783_v52 }
 0x50d   :  { %3663 = vmatpush3.bf16.xpose.msk.msra.mxu0 %vm4278_vm2, %v3658_v51 }
 0x50e   :  { %v3891_v53 = vpop.eup %3890 }
 0x50f   :  { %v3893_v55 = vpop.eup %3892  ;;  %v597_v57 = vsel %vm383_vm1, %v3891_v53, 0.0 }
 0x510   :  { %598 = vadd.xlane.f32.xlu1 %v597_v57  ;;  %v594_v58 = vsel %vm383_vm1, %v3893_v55, 0.0 }
 0x511   :  { %595 = vadd.xlane.f32.xlu0 %v594_v58 }
 0x521   :  { %784 = vrot.lane.b32.xlu1 %v4258_v45, %s4018_s1 }
 0x525   :  { %875 = vrot.lane.b32.xlu1 %v4266_v48, %s4018_s1 }
 0x527   :  { %3826 = vrot.lane.b32.xlu0 %v4272_v50, %s4017_s29 }
 0x52b   :  { %873 = vrot.lane.b32.xlu0 %v4268_v49, %s4018_s1 }
 0x595   :  { %v593_v60 = vpop.xlane.xlu1 %592 }
 0x596   :  { %3894 = vrcp.f32 %v593_v60  ;;  %v590_v61 = vpop.xlane.xlu0 %589 }
 0x597   :  { %3896 = vrcp.f32 %v590_v61 }
 0x59d   :  { %v599_v63 = vpop.xlane.xlu1 %598 }
 0x59e   :  { %3898 = vrcp.f32 %v599_v63  ;;  %v596_v0 = vpop.xlane.xlu0 %595 }
 0x59f   :  { %3900 = vrcp.f32 %v596_v0 }
 0x5a0   :  { %v3895_v1 = vpop.eup %3894 }
 0x5a1   :  { %v3897_v2 = vpop.eup %3896  ;;  %v785_v45 = vpop.permute.xlu1 %784  ;;  %v603_v5 = vmul.f32 %v3895_v1, %v3887_v37 }
 0x5a2   :  { %3405 = vmatmul.mubr.msk.f32.vlgmr.msra.gmra.mrb[4].mxu0 %vm383_vm1, %v785_v45  ;;  %v3827_v48 = vpop.permute.xlu0 %3826  ;;  %v601_v4 = vmul.f32 %v3897_v2, %v3889_v38 }
 0x5a3   :  { %v3829_v6 = vunpack.i.h.bf16 %v3827_v48  ;;  %v3828_v7 = vunpack.i.l.bf16 %v3827_v48 }
 0x5a4   :  { %3390 = vmatprep.mubr.msk.f32.mxu1 %vm383_vm1, %v601_v4 }
 0x5a5   :  { %v3664_v49 = vpack.c.bf16 %v3829_v6, %v3828_v7  ;;  %3391 = vmatmul.mubr.msk.f32.vlgmr.msra.gmra.mrb[8].mxu1 %vm383_vm1, %v603_v5  ;;  %v876_v13 = vpop.permute.xlu1 %875 }
 0x5a6   :  { %3657 = vmatpush3.bf16.msra.mxu1 %v3654_v46  ;;  %v874_v12 = vpop.permute.xlu0 %873 }
 0x5a7   :  { %3666 = vmatprep.subr.msk.bf16.mxu1 %vm4278_vm2, %v3664_v49 }
 0x5a8   :  { %v3899_v8 = vpop.eup %3898 }
 0x5a9   :  { %v3901_v9 = vpop.eup %3900  ;;  %v607_v11 = vmul.f32 %v3899_v8, %v3891_v53 }
 0x5aa   :  { %v605_v10 = vmul.f32 %v3901_v9, %v3893_v55 }
 0x5ac   :  { %3397 = vmatprep.mubr.msk.f32.mxu1 %vm383_vm1, %v605_v10 }
 0x5ad   :  { %3398 = vmatmul.mubr.msk.f32.vlgmr.msra.gmra.mrb[10].mxu1 %vm383_vm1, %v607_v11 }
 0x5ae   :  { %3411 = vmatprep.mubr.msk.f32.mxu1 %vm383_vm1, %v874_v12 }
 0x5af   :  { %3669 = vmatpush3.bf16.xpose.msk.msra.mxu1 %vm4278_vm2, %v3664_v49 }
 0x5b6   :  { %3412 = vmatmul.mubr.msk.f32.vlgmr.msra.gmra.mrb[12].mxu1 %vm383_vm1, %v876_v13 }
 0x675   :  { %v3406_v14 = vpop.f32.mrb[4].mxu0 }
 0x676   :  { %v965_v15 = vmul.f32 0.25, %v3406_v14  ;;  %v864_v16 = vpop.f32.mrb[5].mxu0 }
 0x677   :  { %v964_v17 = vmul.f32 0.25, %v864_v16  ;;  %v179_v16 = vld [vmem:[%s4772_s7 + $0x8] sm:$0xff] }
 0x678   :  { %v4341_v18 = vpop.f32.mrb[8].mxu1  ;;  %v969_v19 = vadd.f32 %v965_v15, %v4296_v3  ;;  %v178_v15 = vld [vmem:[%s4772_s7] sm:$0xff] }
 0x679   :  { %v4344_v20 = vpop.f32.mrb[9].mxu1  ;;  %v968_v21 = vadd.f32 %v964_v17, %v4296_v3  ;;  %v3678_v17 = vpack.c.bf16 %v179_v16, %v178_v15 }
 0x67a   :  { %v975_v22 = vsel %vm383_vm1, %v969_v19, -inf }
 0x67b   :  { %976 = vmax.xlane.f32.xlu1 %v975_v22  ;;  %v972_v23 = vsel %vm383_vm1, %v968_v21, -inf }
 0x67c   :  { %973 = vmax.xlane.f32.xlu0 %v972_v23 }
 0x680   :  { %v4349_v24 = vpop.f32.mrb[10].mxu1 }
 0x681   :  { %v4351_v25 = vpop.f32.mrb[11].mxu1 }
 0x689   :  { %v3413_v26 = vpop.f32.mrb[12].mxu1 }
 0x68a   :  { %v955_v27 = vpop.f32.mrb[13].mxu1  ;;  %v967_v28 = vmul.f32 0.25, %v3413_v26 }
 0x68b   :  { %v966_v29 = vmul.f32 0.25, %v955_v27 }
 0x68c   :  { %v971_v32 = vadd.f32 %v967_v28, %v4296_v3 }
 0x68d   :  { %v970_v30 = vadd.f32 %v966_v29, %v4296_v3 }
 0x68e   :  { %v981_v33 = vsel %vm383_vm1, %v971_v32, -inf }
 0x68f   :  { %v978_v31 = vsel %vm383_vm1, %v970_v30, -inf }
 0x690   :  { %979 = vmax.xlane.f32.xlu0 %v978_v31 }
 0x694   :  { %982 = vmax.xlane.f32.xlu0 %v981_v33 }
 0x708   :  { %v977_v34 = vpop.xlane.xlu1 %976 }
 0x709   :  { %v985_v35 = vsub.f32 %v969_v19, %v977_v34  ;;  %v974_v36 = vpop.xlane.xlu0 %973  ;;  %v180_v19 = vld [vmem:[%s4772_s7 + $0x10] sm:$0xff] }
 0x70a   :  { %v984_v37 = vsub.f32 %v968_v21, %v974_v36  ;;  %v181_v21 = vld [vmem:[%s4772_s7 + $0x18] sm:$0xff] }
 0x70b   :  { %v990_v38 = vmul.f32 1.442695, %v985_v35  ;;  %v3682_v22 = vpack.c.bf16 %v181_v21, %v180_v19 }
 0x70c   :  { %v988_v39 = vmul.f32 1.442695, %v984_v37 }
 0x70d   :  { %3902 = vpow2.f32 %v990_v38 }
 0x70e   :  { %3904 = vpow2.f32 %v988_v39 }
 0x717   :  { %v3903_v40 = vpop.eup %3902 }
 0x718   :  { %v3905_v41 = vpop.eup %3904  ;;  %v999_v42 = vsel %vm383_vm1, %v3903_v40, 0.0 }
 0x719   :  { %1000 = vadd.xlane.f32.xlu1 %v999_v42  ;;  %v996_v43 = vsel %vm383_vm1, %v3905_v41, 0.0 }
 0x71a   :  { %997 = vadd.xlane.f32.xlu0 %v996_v43 }
 0x71d   :  { %v980_v44 = vpop.xlane.xlu0 %979 }
 0x71e   :  { %v986_v46 = vsub.f32 %v970_v30, %v980_v44 }
 0x720   :  { %v992_v51 = vmul.f32 1.442695, %v986_v46 }
 0x721   :  { %v983_v52 = vpop.xlane.xlu0 %982 }
 0x722   :  { %3906 = vpow2.f32 %v992_v51  ;;  %v987_v53 = vsub.f32 %v971_v32, %v983_v52 }
 0x724   :  { %v994_v55 = vmul.f32 1.442695, %v987_v53 }
 0x726   :  { %3908 = vpow2.f32 %v994_v55 }
 0x72c   :  { %v3907_v57 = vpop.eup %3906 }
 0x72d   :  { %v1002_v58 = vsel %vm383_vm1, %v3907_v57, 0.0 }
 0x72e   :  { %1003 = vadd.xlane.f32.xlu0 %v1002_v58 }
 0x730   :  { %v3909_v60 = vpop.eup %3908 }
 0x731   :  { %v1005_v61 = vsel %vm383_vm1, %v3909_v60, 0.0 }
 0x732   :  { %1006 = vadd.xlane.f32.xlu1 %v1005_v61 }
 0x743   :  { %3836 = vrot.lane.b32.xlu1 %v4272_v50, %s4019_s30 }
 0x744   :  { %3831 = vrot.lane.b32.xlu0 %v4262_v47, %s4019_s30 }
 0x7a6   :  { %v1001_v2 = vpop.xlane.xlu1 %1000 }
 0x7a7   :  { %v998_v63 = vpop.xlane.xlu0 %997 }
 0x7a8   :  { %3910 = vrcp.f32 %v998_v63 }
 0x7a9   :  { %3912 = vrcp.f32 %v1001_v2 }
 0x7b2   :  { %v3911_v0 = vpop.eup %3910 }
 0x7b3   :  { %v1009_v1 = vmul.f32 %v3911_v0, %v3905_v41  ;;  %v3913_v50 = vpop.eup %3912 }
 0x7b4   :  { %v1011_v10 = vmul.f32 %v3913_v50, %v3903_v40 }
 0x7b5   :  { %3418 = vmatprep.mubr.msk.f32.mxu0 %vm383_vm1, %v1009_v1 }
 0x7bb   :  { %v1004_v45 = vpop.xlane.xlu0 %1003 }
 0x7bc   :  { %3914 = vrcp.f32 %v1004_v45 }
 0x7bf   :  { %v1007_v48 = vpop.xlane.xlu1 %1006  ;;  %v3832_v4 = vpop.permute.xlu0 %3831 }
 0x7c0   :  { %3916 = vrcp.f32 %v1007_v48  ;;  %v3834_v5 = vunpack.i.h.bf16 %v3832_v4  ;;  %v3833_v6 = vunpack.i.l.bf16 %v3832_v4 }
 0x7c2   :  { %v3670_v7 = vpack.c.bf16 %v3834_v5, %v3833_v6 }
 0x7c3   :  { %v3837_v49 = vpop.permute.xlu1 %3836 }
 0x7c4   :  { %v3839_v8 = vunpack.i.h.bf16 %v3837_v49  ;;  %v3838_v47 = vunpack.i.l.bf16 %v3837_v49  ;;  %3671 = vmatprep.subr.bf16.mxu0 %v3670_v7 }
 0x7c5   :  { %3673 = vmatpush3.bf16.msra.mxu0 %v3670_v7 }
 0x7c6   :  { %v3915_v9 = vpop.eup %3914  ;;  %v3674_v11 = vpack.c.bf16 %v3839_v8, %v3838_v47  ;;  %v192_v47 = vld [vmem:[%s4776_s11] sm:$0xff] }
 0x7c7   :  { %v1013_v12 = vmul.f32 %v3915_v9, %v3907_v57  ;;  %v193_v9 = vld [vmem:[%s4776_s11 + $0x8] sm:$0xff] }
 0x7c8   :  { %3419 = vmatmul.mubr.msk.f32.vlgmr.msra.gmra.mrb[6].mxu0 %vm383_vm1, %v1011_v10  ;;  %3675 = vmatprep.subr.bf16.mxu1 %v3674_v11  ;;  %v3686_v10 = vpack.c.bf16 %v193_v9, %v192_v47 }
 0x7c9   :  { %3677 = vmatpush3.bf16.msra.mxu1 %v3674_v11  ;;  %3425 = vmatprep.mubr.msk.f32.mxu1 %vm383_vm1, %v1013_v12  ;;  %v194_v11 = vld [vmem:[%s4776_s11 + $0x10] sm:$0xff]  ;;  %v195_v12 = vld [vmem:[%s4776_s11 + $0x18] sm:$0xff] }
 0x7ca   :  { %v3917_v13 = vpop.eup %3916  ;;  %3679 = vmatprep.subr.bf16.mxu1 %v3678_v17 }
 0x7cb   :  { %v1015_v14 = vmul.f32 %v3917_v13, %v3909_v60  ;;  %v3690_v13 = vpack.c.bf16 %v195_v12, %v194_v11 }
 0x7cd   :  { %3426 = vmatmul.mubr.msk.f32.vlgmr.msra.gmra.mrb[14].mxu1 %vm383_vm1, %v1015_v14 }
 0x7ce   :  { %3681 = vmatpush3.bf16.msra.mxu1 %v3678_v17 }
 0x7cf   :  { %3683 = vmatprep.subr.bf16.mxu1 %v3682_v22 }
 0x7d2   :  { %3685 = vmatpush3.bf16.msra.mxu1 %v3682_v22 }
 0x7d3   :  { %3687 = vmatprep.subr.bf16.mxu1 %v3686_v10 }
 0x89b   :  { %v3420_v23 = vpop.f32.mrb[6].mxu0 }
 0x89c   :  { %v1094_v26 = vpop.f32.mrb[7].mxu0 }
 0x89d   :  { %1194 = vrot.lane.b32.xlu1 %v1094_v26, %s4020_s21 }
 0x8a0   :  { %v3427_v27 = vpop.f32.mrb[14].mxu1 }
 0x8a1   :  { %v1181_v28 = vpop.f32.mrb[15].mxu1  ;;  %1196 = vrot.lane.b32.xlu1 %v3420_v23, %s4020_s21 }
 0x8a2   :  { %1198 = vrot.lane.b32.xlu0 %v1181_v28, %s4020_s21 }
 0x8a5   :  { %1200 = vrot.lane.b32.xlu1 %v3427_v27, %s4020_s21 }
 0x90f   :  { %v1195_v29 = vpop.permute.xlu1 %1194 }
 0x910   :  { %v1206_v30 = vsel %vm383_vm1, %v4344_v20, %v1195_v29  ;;  %v3124_v20 = vld [vmem:[%s4773_s8] ss:$0 sm:$0xff] }
 0x911   :  { %3436 = vmatprep.mubr.msk.f32.mxu1 %vm224_vm0, %v1206_v30 }
 0x913   :  { %v1197_v31 = vpop.permute.xlu1 %1196 }
 0x914   :  { %v1207_v32 = vsel %vm383_vm1, %v4341_v18, %v1197_v31  ;;  %v1199_v33 = vpop.permute.xlu0 %1198  ;;  %v3125_v31 = vld [vmem:[%s4774_s9] ss:$0 sm:$0xff] }
 0x915   :  { %v1208_v34 = vsel %vm383_vm1, %v4351_v25, %v1199_v33  ;;  %3437 = vmatmul.mubr.msk.f32.vlgmr.msra.gmra.mrb[16].mxu1 %vm224_vm0, %v1207_v32 }
 0x916   :  { %3439 = vmatprep.mubr.msk.f32.mxu1 %vm224_vm0, %v1208_v34  ;;  %3689 = vmatpush3.bf16.msra.mxu1 %v3686_v10 }
 0x917   :  { %v1201_v35 = vpop.permute.xlu1 %1200  ;;  %3691 = vmatprep.subr.bf16.mxu1 %v3690_v13 }
 0x918   :  { %v1209_v36 = vsel %vm383_vm1, %v4349_v24, %v1201_v35  ;;  %v3126_v35 = vld [vmem:[%s4775_s10] ss:$0 sm:$0xff] }
 0x919   :  { %3440 = vmatmul.mubr.msk.f32.gmra.mrb[18].mxu1 %vm224_vm0, %v1209_v36 }
 0x91a   :  { %3693 = vmatpush3.bf16.msra.mxu1 %v3690_v13 }
 0x9e8   :  { %v3438_v37 = vpop.f32.mrb[16].mxu1 }
 0x9e9   :  { %v1308_v18 = vadd.f32 %v3438_v37, %v4220_v59  ;;  %v1288_v38 = vpop.f32.mrb[17].mxu1 }
 0x9ea   :  { %v1307_v25 = vadd.f32 %v1288_v38, %v4215_v56 }
 0x9eb   :  { %v4402_v39 = vadd.f32 %v3124_v20, %v1308_v18 }
 0x9ec   :  { %v4404_v40 = vadd.f32 %v3124_v20, %v1307_v25  ;;  %v3441_v41 = vpop.f32.mrb[18].mxu1 }
 0x9ed   :  { %v1298_v42 = vpop.f32.mrb[19].mxu1  ;;  %v1324_v24 = vsel %vm224_vm0, %v4402_v39, 0.0  ;;  %v1310_v43 = vadd.f32 %v3441_v41, %v4220_v59 }
 0x9ee   :  { %v1309_v44 = vadd.f32 %v1298_v42, %v4224_v62  ;;  %1325 = vadd.xlane.f32.xlu1 %v1324_v24  ;;  %v1321_v46 = vsel %vm224_vm0, %v4404_v40, 0.0 }
 0x9ef   :  { %1322 = vadd.xlane.f32.xlu0 %v1321_v46  ;;  %v4414_v56 = vadd.f32 %v3124_v20, %v1310_v43 }
 0x9f0   :  { %v4412_v51 = vadd.f32 %v3124_v20, %v1309_v44 }
 0x9f1   :  { %v1330_v53 = vsel %vm224_vm0, %v4414_v56, 0.0 }
 0x9f2   :  { %v1327_v52 = vsel %vm224_vm0, %v4412_v51, 0.0 }
 0x9f3   :  { %1328 = vadd.xlane.f32.xlu0 %v1327_v52  ;;  %v202_v52 = vld [vmem:[%s4778_s13] sm:$0xff] }
 0x9f7   :  { %1331 = vadd.xlane.f32.xlu0 %v1330_v53  ;;  %v203_v53 = vld [vmem:[%s4778_s13 + $0x8] sm:$0xff] }
 0xa7b   :  { %v1326_v59 = vpop.xlane.xlu1 %1325 }
 0xa7c   :  { %v1334_v55 = vmul.f32 0.03125, %v1326_v59  ;;  %v1323_v62 = vpop.xlane.xlu0 %1322  ;;  %v3694_v59 = vpack.c.bf16 %v203_v53, %v202_v52 }
 0xa7d   :  { %v1333_v57 = vmul.f32 0.03125, %v1323_v62  ;;  %v205_v62 = vld [vmem:[%s4778_s13 + $0x18] sm:$0xff] }
 0xa7e   :  { %v1338_v58 = vsub.f32 %v4402_v39, %v1334_v55  ;;  %3695 = vmatprep.subr.bf16.mxu0 %v3694_v59  ;;  %v204_v55 = vld [vmem:[%s4778_s13 + $0x10] sm:$0xff] }
 0xa7f   :  { %v1337_v60 = vsub.f32 %v4404_v40, %v1333_v57  ;;  %3697 = vmatpush3.bf16.msra.mxu0 %v3694_v59  ;;  %v3698_v57 = vpack.c.bf16 %v205_v62, %v204_v55 }
 0xa80   :  { %v1329_v61 = vpop.xlane.xlu0 %1328  ;;  %v1342_v63 = vmul.f32 %v1338_v58, %v1338_v58 }
 0xa81   :  { %v1335_v0 = vmul.f32 0.03125, %v1329_v61  ;;  %v1341_v1 = vmul.f32 %v1337_v60, %v1337_v60  ;;  %3699 = vmatprep.subr.bf16.mxu0 %v3698_v57 }
 0xa82   :  { %v1348_v2 = vsel %vm224_vm0, %v1342_v63, 0.0  ;;  %v208_v63 = vld [vmem:[%s4778_s13 + $0x30] sm:$0xff] }
 0xa83   :  { %v1339_v45 = vsub.f32 %v4412_v51, %v1335_v0  ;;  %1349 = vadd.xlane.f32.xlu1 %v1348_v2  ;;  %v1345_v48 = vsel %vm224_vm0, %v1341_v1, 0.0  ;;  %3701 = vmatpush3.bf16.msra.mxu0 %v3698_v57  ;;  %v209_v0 = vld [vmem:[%s4778_s13 + $0x38] sm:$0xff]  ;;  %v3127_v2 = vld [vmem:[%s4777_s12] ss:$0 sm:$0xff] }
 0xa84   :  { %1346 = vadd.xlane.f32.xlu0 %v1345_v48  ;;  %v1332_v4 = vpop.xlane.xlu0 %1331  ;;  %v3706_v1 = vpack.c.bf16 %v209_v0, %v208_v63 }
 0xa85   :  { %v1336_v5 = vmul.f32 0.03125, %v1332_v4  ;;  %v1343_v6 = vmul.f32 %v1339_v45, %v1339_v45 }
 0xa87   :  { %v1340_v7 = vsub.f32 %v4414_v56, %v1336_v5  ;;  %v1351_v50 = vsel %vm224_vm0, %v1343_v6, 0.0 }
 0xa88   :  { %1352 = vadd.xlane.f32.xlu0 %v1351_v50 }
 0xa89   :  { %v1344_v49 = vmul.f32 %v1340_v7, %v1340_v7 }
 0xa8b   :  { %v1354_v8 = vsel %vm224_vm0, %v1344_v49, 0.0 }
 0xa8c   :  { %1355 = vadd.xlane.f32.xlu1 %v1354_v8 }
 0xb10   :  { %v1350_v14 = vpop.xlane.xlu1 %1349 }
 0xb11   :  { %v1358_v15 = vmul.f32 0.03125, %v1350_v14  ;;  %v1347_v16 = vpop.xlane.xlu0 %1346 }
 0xb12   :  { %v1357_v17 = vmul.f32 0.03125, %v1347_v16 }
 0xb13   :  { %v1362_v19 = vadd.f32 1e-05, %v1358_v15 }
 0xb14   :  { %v1361_v21 = vadd.f32 1e-05, %v1357_v17 }
 0xb15   :  { %3918 = vrsqrt.f32 %v1362_v19  ;;  %v1353_v22 = vpop.xlane.xlu0 %1352 }
 0xb16   :  { %3920 = vrsqrt.f32 %v1361_v21  ;;  %v1359_v23 = vmul.f32 0.03125, %v1353_v22 }
 0xb18   :  { %v1363_v26 = vadd.f32 1e-05, %v1359_v23 }
 0xb19   :  { %v1356_v27 = vpop.xlane.xlu1 %1355 }
 0xb1a   :  { %3922 = vrsqrt.f32 %v1363_v26  ;;  %v1360_v28 = vmul.f32 0.03125, %v1356_v27 }
 0xb1c   :  { %v1364_v29 = vadd.f32 1e-05, %v1360_v28 }
 0xb1e   :  { %3924 = vrsqrt.f32 %v1364_v29 }
 0xb1f   :  { %v3919_v30 = vpop.eup %3918 }
 0xb20   :  { %v3921_v32 = vpop.eup %3920  ;;  %v1370_v33 = vmul.f32 %v3919_v30, %v1338_v58  ;;  %v206_v58 = vld [vmem:[%s4778_s13 + $0x20] sm:$0xff] }
 0xb21   :  { %v1369_v34 = vmul.f32 %v3921_v32, %v1337_v60  ;;  %v207_v60 = vld [vmem:[%s4778_s13 + $0x28] sm:$0xff] }
 0xb22   :  { %v1380_v36 = vmul.f32 %v3125_v31, %v1370_v33  ;;  %v3702_v61 = vpack.c.bf16 %v207_v60, %v206_v58 }
 0xb23   :  { %v1379_v20 = vmul.f32 %v3125_v31, %v1369_v34 }
 0xb24   :  { %v3923_v37 = vpop.eup %3922  ;;  %v1390_v25 = vadd.f32 %v3126_v35, %v1380_v36  ;;  %3703 = vmatprep.subr.bf16.mxu0 %v3702_v61 }
 0xb25   :  { %v1389_v18 = vadd.f32 %v3126_v35, %v1379_v20  ;;  %v1371_v38 = vmul.f32 %v3923_v37, %v1339_v45  ;;  %3705 = vmatpush3.bf16.msra.mxu0 %v3702_v61 }
 0xb26   :  { %3707 = vmatprep.subr.bf16.mxu0 %v3706_v1 }
 0xb27   :  { %3450 = vmatprep.mubr.msk.f32.mxu1 %vm224_vm0, %v1389_v18  ;;  %v1381_v41 = vmul.f32 %v3125_v31, %v1371_v38 }
 0xb28   :  { %v3925_v42 = vpop.eup %3924  ;;  %3451 = vmatmul.mubr.msk.f32.vlgmr.msra.gmra.mrb[20].mxu1 %vm224_vm0, %v1390_v25 }
 0xb29   :  { %v1391_v24 = vadd.f32 %v3126_v35, %v1381_v41  ;;  %v1372_v43 = vmul.f32 %v3925_v42, %v1340_v7  ;;  %3709 = vmatpush3.bf16.msra.mxu0 %v3706_v1 }
 0xb2b   :  { %3453 = vmatprep.mubr.msk.f32.mxu1 %vm224_vm0, %v1391_v24  ;;  %v1382_v44 = vmul.f32 %v3125_v31, %v1372_v43 }
 0xb2d   :  { %v1392_v46 = vadd.f32 %v3126_v35, %v1382_v44 }
 0xb2f   :  { %3454 = vmatmul.mubr.msk.f32.gmra.mrb[22].mxu1 %vm224_vm0, %v1392_v46  ;;  %v3136_v46 = vld [vmem:[%s4779_s14] ss:$0 sm:$0xff] }
 0xbfb   :  { %v3452_v45 = vpop.f32.mrb[20].mxu1 }
 0xbfc   :  { %v1483_v48 = vadd.f32 %v3452_v45, %v3127_v2  ;;  %v1477_v4 = vpop.f32.mrb[21].mxu1 }
 0xbfd   :  { %v1478_v5 = vadd.f32 %v3127_v2, %v1477_v4 }
 0xbfe   :  { %v1497_v6 = vmul.f32 %v1483_v48, %v1483_v48 }
 0xbff   :  { %v1496_v7 = vmul.f32 %v1478_v5, %v1478_v5 }
 0xc00   :  { %v1501_v50 = vmul.f32 %v1497_v6, %v1483_v48 }
 0xc01   :  { %v1500_v49 = vmul.f32 %v1496_v7, %v1478_v5 }
 0xc02   :  { %v1505_v8 = vmul.f32 0.044715, %v1501_v50  ;;  %v3455_v47 = vpop.f32.mrb[22].mxu1 }
 0xc03   :  { %v1504_v9 = vmul.f32 0.044715, %v1500_v49  ;;  %v1493_v10 = vadd.f32 %v3455_v47, %v3127_v2  ;;  %v1487_v11 = vpop.f32.mrb[23].mxu1 }
 0xc04   :  { %v1509_v12 = vadd.f32 %v1505_v8, %v1483_v48  ;;  %v1488_v13 = vadd.f32 %v3127_v2, %v1487_v11 }
 0xc05   :  { %v1508_v14 = vadd.f32 %v1504_v9, %v1478_v5  ;;  %v1499_v15 = vmul.f32 %v1493_v10, %v1493_v10 }
 0xc06   :  { %v1513_v16 = vmul.f32 0.7978846, %v1509_v12  ;;  %v1498_v17 = vmul.f32 %v1488_v13, %v1488_v13 }
 0xc07   :  { %v1512_v19 = vmul.f32 0.7978846, %v1508_v14  ;;  %v1503_v21 = vmul.f32 %v1499_v15, %v1493_v10 }
 0xc08   :  { %3926 = vtanh.f32 %v1513_v16  ;;  %v1502_v22 = vmul.f32 %v1498_v17, %v1488_v13 }
 0xc09   :  { %3928 = vtanh.f32 %v1512_v19  ;;  %v1507_v23 = vmul.f32 0.044715, %v1503_v21  ;;  %v174_v19 = vld [vmem:[%s4771_s6 + $0x20] sm:$0xff]  ;;  %v175_v21 = vld [vmem:[%s4771_s6 + $0x28] sm:$0xff] }
 0xc0a   :  { %v1506_v26 = vmul.f32 0.044715, %v1502_v22  ;;  %v3710_v22 = vpack.c.bf16 %v175_v21, %v174_v19 }
 0xc0b   :  { %v1511_v27 = vadd.f32 %v1507_v23, %v1493_v10  ;;  %v176_v23 = vld [vmem:[%s4771_s6 + $0x30] sm:$0xff] }
 0xc0c   :  { %v1510_v28 = vadd.f32 %v1506_v26, %v1488_v13  ;;  %3711 = vmatprep.subr.bf16.mxu1 %v3710_v22  ;;  %v177_v26 = vld [vmem:[%s4771_s6 + $0x38] sm:$0xff] }
 0xc0d   :  { %v1515_v29 = vmul.f32 0.7978846, %v1511_v27  ;;  %3713 = vmatpush3.bf16.msra.mxu1 %v3710_v22  ;;  %v3714_v27 = vpack.c.bf16 %v177_v26, %v176_v23 }
 0xc0e   :  { %v1514_v30 = vmul.f32 0.7978846, %v1510_v28 }
 0xc0f   :  { %3930 = vtanh.f32 %v1515_v29  ;;  %3715 = vmatprep.subr.bf16.mxu1 %v3714_v27 }
 0xc10   :  { %3932 = vtanh.f32 %v1514_v30 }
 0xc11   :  { %3717 = vmatpush3.bf16.msra.mxu1 %v3714_v27 }
 0xc12   :  { %v3927_v31 = vpop.eup %3926 }
 0xc13   :  { %v3929_v32 = vpop.eup %3928  ;;  %v1521_v33 = vadd.f32 1.0, %v3927_v31 }
 0xc14   :  { %v1520_v34 = vadd.f32 1.0, %v3929_v32 }
 0xc15   :  { %v1525_v35 = vmul.f32 0.5, %v1521_v33 }
 0xc16   :  { %v1524_v36 = vmul.f32 0.5, %v1520_v34 }
 0xc17   :  { %v1529_v18 = vmul.f32 %v1525_v35, %v1483_v48 }
 0xc18   :  { %v1528_v20 = vmul.f32 %v1524_v36, %v1478_v5 }
 0xc19   :  { %v3931_v37 = vpop.eup %3930 }
 0xc1a   :  { %v3933_v38 = vpop.eup %3932  ;;  %3472 = vmatprep.mubr.msk.f32.mxu0 %vm1532_vm4, %v1528_v20  ;;  %v1523_v25 = vadd.f32 1.0, %v3931_v37 }
 0xc1b   :  { %3473 = vmatmul.mubr.msk.f32.vlgmr.msra.gmra.mrb[8].mxu0 %vm1532_vm4, %v1529_v18  ;;  %v1522_v41 = vadd.f32 1.0, %v3933_v38 }
 0xc1c   :  { %v1527_v42 = vmul.f32 0.5, %v1523_v25  ;;  %v3137_v25 = vld [vmem:[%s4769_s4 + $0x1] ss:$0 sm:$0xff] }
 0xc1d   :  { %v1526_v24 = vmul.f32 0.5, %v1522_v41 }
 0xc1e   :  { %v1531_v44 = vmul.f32 %v1527_v42, %v1493_v10 }
 0xc1f   :  { %v1530_v43 = vmul.f32 %v1526_v24, %v1488_v13 }
 0xc21   :  { %3475 = vmatprep.mubr.msk.f32.mxu0 %vm1532_vm4, %v1530_v43  ;;  %v3138_v43 = vld [vmem:[%s4770_s5 + $0x1] ss:$0 sm:$0xff] }
 0xc22   :  { %3476 = vmatmul.mubr.msk.f32.gmra.mrb[10].mxu0 %vm1532_vm4, %v1531_v44 }
 0xcee   :  { %v3474_v52 = vpop.f32.mrb[8].mxu0 }
 0xcef   :  { %v1631_v53 = vadd.f32 %v3474_v52, %v4402_v39  ;;  %v1611_v59 = vpop.f32.mrb[9].mxu0 }
 0xcf0   :  { %v1630_v55 = vadd.f32 %v1611_v59, %v4404_v40 }
 0xcf1   :  { %v4486_v62 = vadd.f32 %v3136_v46, %v1631_v53 }
 0xcf2   :  { %v4488_v57 = vadd.f32 %v3136_v46, %v1630_v55 }
 0xcf3   :  { %v1647_v58 = vsel %vm224_vm0, %v4486_v62, 0.0 }
 0xcf4   :  { %1648 = vadd.xlane.f32.xlu1 %v1647_v58  ;;  %v1644_v60 = vsel %vm224_vm0, %v4488_v57, 0.0 }
 0xcf5   :  { %1645 = vadd.xlane.f32.xlu0 %v1644_v60  ;;  %v3477_v61 = vpop.f32.mrb[10].mxu0 }
 0xcf6   :  { %v1633_v63 = vadd.f32 %v3477_v61, %v4414_v56  ;;  %v1621_v0 = vpop.f32.mrb[11].mxu0 }
 0xcf7   :  { %v1632_v39 = vadd.f32 %v1621_v0, %v4412_v51 }
 0xcf8   :  { %v4496_v1 = vadd.f32 %v3136_v46, %v1633_v63 }
 0xcf9   :  { %v4498_v40 = vadd.f32 %v3136_v46, %v1632_v39 }
 0xcfa   :  { %v1653_v2 = vsel %vm224_vm0, %v4496_v1, 0.0 }
 0xcfb   :  { %1654 = vadd.xlane.f32.xlu1 %v1653_v2  ;;  %v1650_v45 = vsel %vm224_vm0, %v4498_v40, 0.0 }
 0xcfc   :  { %1651 = vadd.xlane.f32.xlu0 %v1650_v45 }
 0xd81   :  { %v1649_v48 = vpop.xlane.xlu1 %1648 }
 0xd82   :  { %v1657_v4 = vmul.f32 0.03125, %v1649_v48  ;;  %v1646_v5 = vpop.xlane.xlu0 %1645 }
 0xd83   :  { %v1656_v6 = vmul.f32 0.03125, %v1646_v5 }
 0xd84   :  { %v1661_v56 = vsub.f32 %v4486_v62, %v1657_v4 }
 0xd85   :  { %v1660_v51 = vsub.f32 %v4488_v57, %v1656_v6 }
 0xd86   :  { %v1665_v7 = vmul.f32 %v1661_v56, %v1661_v56 }
 0xd87   :  { %v1664_v50 = vmul.f32 %v1660_v51, %v1660_v51 }
 0xd88   :  { %v1655_v49 = vpop.xlane.xlu1 %1654  ;;  %v1671_v8 = vsel %vm224_vm0, %v1665_v7, 0.0 }
 0xd89   :  { %v1659_v47 = vmul.f32 0.03125, %v1655_v49  ;;  %v1652_v9 = vpop.xlane.xlu0 %1651  ;;  %1672 = vadd.xlane.f32.xlu1 %v1671_v8  ;;  %v1668_v10 = vsel %vm224_vm0, %v1664_v50, 0.0 }
 0xd8a   :  { %v1658_v11 = vmul.f32 0.03125, %v1652_v9  ;;  %1669 = vadd.xlane.f32.xlu0 %v1668_v10 }
 0xd8b   :  { %v1663_v12 = vsub.f32 %v4496_v1, %v1659_v47 }
 0xd8c   :  { %v1662_v13 = vsub.f32 %v4498_v40, %v1658_v11 }
 0xd8d   :  { %v1667_v14 = vmul.f32 %v1663_v12, %v1663_v12 }
 0xd8e   :  { %v1666_v15 = vmul.f32 %v1662_v13, %v1662_v13 }
 0xd8f   :  { %v1677_v16 = vsel %vm224_vm0, %v1667_v14, 0.0 }
 0xd90   :  { %1678 = vadd.xlane.f32.xlu1 %v1677_v16  ;;  %v1674_v17 = vsel %vm224_vm0, %v1666_v15, 0.0 }
 0xd91   :  { %1675 = vadd.xlane.f32.xlu0 %v1674_v17 }
 0xe16   :  { %v1673_v28 = vpop.xlane.xlu1 %1672 }
 0xe17   :  { %v1681_v29 = vmul.f32 0.03125, %v1673_v28  ;;  %v1670_v30 = vpop.xlane.xlu0 %1669 }
 0xe18   :  { %v1680_v31 = vmul.f32 0.03125, %v1670_v30 }
 0xe19   :  { %v1685_v32 = vadd.f32 1e-05, %v1681_v29 }
 0xe1a   :  { %v1684_v33 = vadd.f32 1e-05, %v1680_v31 }
 0xe1b   :  { %3934 = vrsqrt.f32 %v1685_v32 }
 0xe1c   :  { %3936 = vrsqrt.f32 %v1684_v33 }
 0xe1d   :  { %v1679_v34 = vpop.xlane.xlu1 %1678 }
 0xe1e   :  { %v1683_v35 = vmul.f32 0.03125, %v1679_v34  ;;  %v1676_v36 = vpop.xlane.xlu0 %1675 }
 0xe1f   :  { %v1682_v20 = vmul.f32 0.03125, %v1676_v36 }
 0xe20   :  { %v1687_v37 = vadd.f32 1e-05, %v1683_v35 }
 0xe21   :  { %v1686_v18 = vadd.f32 1e-05, %v1682_v20 }
 0xe22   :  { %3938 = vrsqrt.f32 %v1687_v37 }
 0xe23   :  { %3940 = vrsqrt.f32 %v1686_v18 }
 0xe25   :  { %v3935_v38 = vpop.eup %3934 }
 0xe26   :  { %v3937_v41 = vpop.eup %3936  ;;  %v1693_v42 = vmul.f32 %v3935_v38, %v1661_v56 }
 0xe27   :  { %v1692_v24 = vmul.f32 %v3937_v41, %v1660_v51 }
 0xe28   :  { %v1703_v44 = vmul.f32 %v3137_v25, %v1693_v42 }
 0xe29   :  { %v1702_v46 = vmul.f32 %v3137_v25, %v1692_v24 }
 0xe2a   :  { %v1713_v59 = vadd.f32 %v3138_v43, %v1703_v44 }
 0xe2b   :  { %v1712_v52 = vadd.f32 %v3138_v43, %v1702_v46 }
 0xe2c   :  { %v3939_v53 = vpop.eup %3938 }
 0xe2d   :  { %v3941_v55 = vpop.eup %3940  ;;  %3486 = vmatprep.mubr.msk.f32.mxu1 %vm224_vm0, %v1712_v52  ;;  %v1695_v58 = vmul.f32 %v3939_v53, %v1663_v12 }
 0xe2e   :  { %3487 = vmatmul.mubr.msk.f32.vlgmr.msra.gmra.mrb[24].mxu1 %vm224_vm0, %v1713_v59  ;;  %v1694_v60 = vmul.f32 %v3941_v55, %v1662_v13 }
 0xe2f   :  { %v1705_v61 = vmul.f32 %v3137_v25, %v1695_v58 }
 0xe30   :  { %v1704_v63 = vmul.f32 %v3137_v25, %v1694_v60 }
 0xe31   :  { %v1715_v39 = vadd.f32 %v3138_v43, %v1705_v61 }
 0xe32   :  { %v1714_v0 = vadd.f32 %v3138_v43, %v1704_v63 }
 0xe34   :  { %3489 = vmatprep.mubr.msk.f32.mxu1 %vm224_vm0, %v1714_v0 }
 0xe35   :  { %3490 = vmatmul.mubr.msk.f32.gmra.mrb[26].mxu1 %vm224_vm0, %v1715_v39 }
 0xf01   :  { %v4534_v2 = vpop.f32.mrb[24].mxu1 }
 0xf02   :  { %v4536_v45 = vpop.f32.mrb[25].mxu1 }
 0xf03   :  { %3496 = vmatprep.mubr.msk.f32.mxu1 %vm383_vm1, %v4536_v45  ;;  %v4542_v48 = vpack.i.bf16 %v4534_v2, %v4536_v45 }
 0xf05   :  { %3841 = vrot.lane.b32.xlu0 %v4542_v48, %s4014_s27 }
 0xf08   :  { %v4546_v4 = vpop.f32.mrb[26].mxu1 }
 0xf09   :  { %v4548_v5 = vpop.f32.mrb[27].mxu1 }
 0xf0a   :  { %3503 = vmatprep.mubr.msk.f32.mxu0 %vm383_vm1, %v4548_v5  ;;  %v4554_v6 = vpack.i.bf16 %v4546_v4, %v4548_v5 }
 0xf0c   :  { %3846 = vrot.lane.b32.xlu1 %v4554_v6, %s4014_s27 }
 0xf77   :  { %v3842_v56 = vpop.permute.xlu0 %3841 }
 0xf78   :  { %v3844_v51 = vunpack.i.h.bf16 %v3842_v56  ;;  %v3843_v7 = vunpack.i.l.bf16 %v3842_v56 }
 0xf7a   :  { %v3718_v50 = vpack.c.bf16 %v3844_v51, %v3843_v7 }
 0xf7c   :  { %3720 = vmatprep.subr.msk.bf16.mxu1 %vm4278_vm2, %v3718_v50 }
 0xf7d   :  { %3723 = vmatpush3.bf16.xpose.msk.msra.mxu1 %vm4278_vm2, %v3718_v50 }
 0xf7e   :  { %v3847_v49 = vpop.permute.xlu1 %3846 }
 0xf7f   :  { %v3849_v8 = vunpack.i.h.bf16 %v3847_v49  ;;  %v3848_v47 = vunpack.i.l.bf16 %v3847_v49 }
 0xf81   :  { %v3724_v9 = vpack.c.bf16 %v3849_v8, %v3848_v47 }
 0xf83   :  { %3726 = vmatprep.subr.msk.bf16.mxu0 %vm4278_vm2, %v3724_v9 }
 0xf84   :  { %3497 = vmatmul.mubr.msk.f32.vlgmr.msra.gmra.mrb[28].mxu1 %vm383_vm1, %v4534_v2  ;;  %3729 = vmatpush3.bf16.xpose.msk.msra.mxu0 %vm4278_vm2, %v3724_v9 }
 0xf8b   :  { %3504 = vmatmul.mubr.msk.f32.vlgmr.msra.gmra.mrb[12].mxu0 %vm383_vm1, %v4546_v4 }
0x1057   :  { %v3498_v10 = vpop.f32.mrb[28].mxu1 }
0x1058   :  { %v1992_v11 = vmul.f32 0.25, %v3498_v10  ;;  %v1893_v12 = vpop.f32.mrb[29].mxu1 }
0x1059   :  { %v1991_v13 = vmul.f32 0.25, %v1893_v12 }
0x105a   :  { %v1996_v14 = vadd.f32 %v1992_v11, %v4296_v3 }
0x105b   :  { %v1995_v15 = vadd.f32 %v1991_v13, %v4296_v3 }
0x105c   :  { %v2002_v16 = vsel %vm383_vm1, %v1996_v14, -inf }
0x105d   :  { %2003 = vmax.xlane.f32.xlu0 %v2002_v16  ;;  %v1999_v17 = vsel %vm383_vm1, %v1995_v15, -inf }
0x105e   :  { %v3505_v19 = vpop.f32.mrb[12].mxu0  ;;  %2000 = vmax.xlane.f32.xlu1 %v1999_v17 }
0x105f   :  { %v1994_v21 = vmul.f32 0.25, %v3505_v19  ;;  %v1982_v22 = vpop.f32.mrb[13].mxu0 }
0x1060   :  { %v1993_v23 = vmul.f32 0.25, %v1982_v22 }
0x1061   :  { %v1998_v26 = vadd.f32 %v1994_v21, %v4296_v3 }
0x1062   :  { %v1997_v27 = vadd.f32 %v1993_v23, %v4296_v3 }
0x1063   :  { %v2008_v28 = vsel %vm383_vm1, %v1998_v26, -inf }
0x1064   :  { %2009 = vmax.xlane.f32.xlu1 %v2008_v28  ;;  %v2005_v29 = vsel %vm383_vm1, %v1997_v27, -inf }
0x1065   :  { %2006 = vmax.xlane.f32.xlu0 %v2005_v29 }
0x10ea   :  { %v2004_v30 = vpop.xlane.xlu0 %2003 }
0x10eb   :  { %v2012_v31 = vsub.f32 %v1996_v14, %v2004_v30  ;;  %v2001_v32 = vpop.xlane.xlu1 %2000 }
0x10ec   :  { %v2011_v33 = vsub.f32 %v1995_v15, %v2001_v32 }
0x10ed   :  { %v2017_v34 = vmul.f32 1.442695, %v2012_v31 }
0x10ee   :  { %v2015_v35 = vmul.f32 1.442695, %v2011_v33 }
0x10ef   :  { %3942 = vpow2.f32 %v2017_v34 }
0x10f0   :  { %3944 = vpow2.f32 %v2015_v35 }
0x10f1   :  { %v2010_v41 = vpop.xlane.xlu1 %2009 }
0x10f2   :  { %v2007_v38 = vpop.xlane.xlu0 %2006  ;;  %v2014_v24 = vsub.f32 %v1998_v26, %v2010_v41 }
0x10f3   :  { %v2013_v25 = vsub.f32 %v1997_v27, %v2007_v38 }
0x10f4   :  { %v2021_v43 = vmul.f32 1.442695, %v2014_v24 }
0x10f5   :  { %v2019_v42 = vmul.f32 1.442695, %v2013_v25 }
0x10f7   :  { %3946 = vpow2.f32 %v2019_v42 }
0x10f8   :  { %3948 = vpow2.f32 %v2021_v43 }
0x10f9   :  { %v3943_v36 = vpop.eup %3942 }
0x10fa   :  { %v3945_v20 = vpop.eup %3944  ;;  %v2026_v37 = vsel %vm383_vm1, %v3943_v36, 0.0 }
0x10fb   :  { %2027 = vadd.xlane.f32.xlu1 %v2026_v37  ;;  %v2023_v18 = vsel %vm383_vm1, %v3945_v20, 0.0 }
0x10fc   :  { %2024 = vadd.xlane.f32.xlu0 %v2023_v18 }
0x1101   :  { %v3947_v44 = vpop.eup %3946 }
0x1102   :  { %v2029_v46 = vsel %vm383_vm1, %v3947_v44, 0.0  ;;  %v3949_v52 = vpop.eup %3948 }
0x1103   :  { %v2032_v53 = vsel %vm383_vm1, %v3949_v52, 0.0 }
0x110c   :  { %3856 = vrot.lane.b32.xlu1 %v4554_v6, %s4016_s28 }
0x1110   :  { %3861 = vrot.lane.b32.xlu1 %v4542_v48, %s4017_s29 }
0x1112   :  { %3851 = vrot.lane.b32.xlu0 %v4542_v48, %s4016_s28 }
0x1114   :  { %3866 = vrot.lane.b32.xlu1 %v4554_v6, %s4017_s29 }
0x1131   :  { %2030 = vadd.xlane.f32.xlu0 %v2029_v46 }
0x1138   :  { %2033 = vadd.xlane.f32.xlu1 %v2032_v53 }
0x1147   :  { %2217 = vrot.lane.b32.xlu0 %v4536_v45, %s4018_s1 }
0x1149   :  { %2219 = vrot.lane.b32.xlu1 %v4534_v2, %s4018_s1 }
0x114b   :  { %2308 = vrot.lane.b32.xlu0 %v4548_v5, %s4018_s1 }
0x114d   :  { %2310 = vrot.lane.b32.xlu1 %v4546_v4, %s4018_s1 }
0x1188   :  { %v2028_v59 = vpop.xlane.xlu1 %2027 }
0x1189   :  { %3950 = vrcp.f32 %v2028_v59  ;;  %v2025_v55 = vpop.xlane.xlu0 %2024 }
0x118a   :  { %3952 = vrcp.f32 %v2025_v55 }
0x118c   :  { %v3857_v58 = vpop.permute.xlu1 %3856 }
0x118d   :  { %v3852_v60 = vpop.permute.xlu0 %3851  ;;  %v3859_v61 = vunpack.i.h.bf16 %v3857_v58  ;;  %v3858_v63 = vunpack.i.l.bf16 %v3857_v58 }
0x118e   :  { %v3854_v0 = vunpack.i.h.bf16 %v3852_v60  ;;  %v3853_v39 = vunpack.i.l.bf16 %v3852_v60 }
0x118f   :  { %v3734_v7 = vpack.c.bf16 %v3859_v61, %v3858_v63 }
0x1190   :  { %v3730_v45 = vpack.c.bf16 %v3854_v0, %v3853_v39  ;;  %v3862_v56 = vpop.permute.xlu1 %3861 }
0x1191   :  { %v3864_v51 = vunpack.i.h.bf16 %v3862_v56  ;;  %v3863_v2 = vunpack.i.l.bf16 %v3862_v56 }
0x1192   :  { %3731 = vmatprep.subr.bf16.mxu1 %v3730_v45 }
0x1193   :  { %v3951_v5 = vpop.eup %3950  ;;  %v3738_v50 = vpack.c.bf16 %v3864_v51, %v3863_v2  ;;  %3733 = vmatpush3.bf16.msra.mxu1 %v3730_v45 }
0x1194   :  { %v3953_v4 = vpop.eup %3952  ;;  %v3867_v49 = vpop.permute.xlu1 %3866  ;;  %3735 = vmatprep.subr.bf16.mxu1 %v3734_v7  ;;  %v2038_v10 = vmul.f32 %v3951_v5, %v3943_v36 }
0x1195   :  { %v3869_v8 = vunpack.i.h.bf16 %v3867_v49  ;;  %v3868_v47 = vunpack.i.l.bf16 %v3867_v49  ;;  %3740 = vmatprep.subr.msk.bf16.mxu0 %vm4278_vm2, %v3738_v50  ;;  %v2036_v9 = vmul.f32 %v3953_v4, %v3945_v20 }
0x1196   :  { %3743 = vmatpush3.bf16.xpose.msk.msra.mxu0 %vm4278_vm2, %v3738_v50 }
0x1197   :  { %v3744_v11 = vpack.c.bf16 %v3869_v8, %v3868_v47  ;;  %3510 = vmatprep.mubr.msk.f32.mxu1 %vm383_vm1, %v2036_v9 }
0x1198   :  { %3511 = vmatmul.mubr.msk.f32.vlgmr.msra.gmra.mrb[30].mxu1 %vm383_vm1, %v2038_v10 }
0x1199   :  { %3737 = vmatpush3.bf16.msra.mxu1 %v3734_v7 }
0x119a   :  { %3746 = vmatprep.subr.msk.bf16.mxu1 %vm4278_vm2, %v3744_v11 }
0x11be   :  { %v2031_v12 = vpop.xlane.xlu0 %2030 }
0x11bf   :  { %3954 = vrcp.f32 %v2031_v12 }
0x11c2   :  { %v2218_v13 = vpop.permute.xlu0 %2217 }
0x11c3   :  { %3524 = vmatprep.mubr.msk.f32.mxu0 %vm383_vm1, %v2218_v13 }
0x11c5   :  { %v2034_v14 = vpop.xlane.xlu1 %2033 }
0x11c6   :  { %3956 = vrcp.f32 %v2034_v14  ;;  %v2309_v22 = vpop.permute.xlu0 %2308 }
0x11c9   :  { %v3955_v15 = vpop.eup %3954  ;;  %v2220_v16 = vpop.permute.xlu1 %2219 }
0x11ca   :  { %3525 = vmatmul.mubr.msk.f32.vlgmr.msra.gmra.mrb[14].mxu0 %vm383_vm1, %v2220_v16  ;;  %v2040_v17 = vmul.f32 %v3955_v15, %v3947_v44 }
0x11cc   :  { %3517 = vmatprep.mubr.msk.f32.mxu1 %vm383_vm1, %v2040_v17 }
0x11cd   :  { %v2311_v23 = vpop.permute.xlu1 %2310 }
0x11d0   :  { %v3957_v19 = vpop.eup %3956 }
0x11d1   :  { %v2042_v21 = vmul.f32 %v3957_v19, %v3949_v52 }
0x11d3   :  { %3518 = vmatmul.mubr.msk.f32.vlgmr.msra.gmra.mrb[32].mxu1 %vm383_vm1, %v2042_v21 }
0x11d4   :  { %3749 = vmatpush3.bf16.xpose.msk.msra.mxu1 %vm4278_vm2, %v3744_v11  ;;  %3531 = vmatprep.mubr.msk.f32.mxu1 %vm383_vm1, %v2309_v22 }
0x11db   :  { %3532 = vmatmul.mubr.msk.f32.vlgmr.msra.gmra.mrb[34].mxu1 %vm383_vm1, %v2311_v23 }
0x126b   :  { %v4614_v26 = vpop.f32.mrb[30].mxu1 }
0x126c   :  { %v4616_v27 = vpop.f32.mrb[31].mxu1 }
0x129d   :  { %v3526_v28 = vpop.f32.mrb[14].mxu0 }
0x129e   :  { %v2400_v29 = vmul.f32 0.25, %v3526_v28  ;;  %v2299_v30 = vpop.f32.mrb[15].mxu0  ;;  %v182_v28 = vld [vmem:[%s4772_s7 + $0x20] sm:$0xff] }
0x129f   :  { %v2399_v31 = vmul.f32 0.25, %v2299_v30 }
0x12a0   :  { %v2404_v32 = vadd.f32 %v2400_v29, %v4296_v3  ;;  %v183_v29 = vld [vmem:[%s4772_s7 + $0x28] sm:$0xff] }
0x12a1   :  { %v2403_v33 = vadd.f32 %v2399_v31, %v4296_v3  ;;  %v3758_v30 = vpack.c.bf16 %v183_v29, %v182_v28  ;;  %v184_v31 = vld [vmem:[%s4772_s7 + $0x30] sm:$0xff] }
0x12a2   :  { %v2410_v54 = vsel %vm383_vm1, %v2404_v32, -inf }
0x12a3   :  { %2411 = vmax.xlane.f32.xlu1 %v2410_v54  ;;  %v2407_v34 = vsel %vm383_vm1, %v2403_v33, -inf }
0x12a4   :  { %2408 = vmax.xlane.f32.xlu0 %v2407_v34 }
0x12a6   :  { %v4622_v35 = vpop.f32.mrb[32].mxu1 }
0x12a7   :  { %v4624_v36 = vpop.f32.mrb[33].mxu1 }
0x12ae   :  { %v3533_v20 = vpop.f32.mrb[34].mxu1 }
0x12af   :  { %v2390_v37 = vpop.f32.mrb[35].mxu1  ;;  %v2402_v18 = vmul.f32 0.25, %v3533_v20 }
0x12b0   :  { %v2401_v38 = vmul.f32 0.25, %v2390_v37 }
0x12b1   :  { %v2406_v42 = vadd.f32 %v2402_v18, %v4296_v3 }
0x12b2   :  { %v2405_v25 = vadd.f32 %v2401_v38, %v4296_v3 }
0x12b3   :  { %v2416_v24 = vsel %vm383_vm1, %v2406_v42, -inf }
0x12b4   :  { %v2413_v41 = vsel %vm383_vm1, %v2405_v25, -inf }
0x12b5   :  { %2414 = vmax.xlane.f32.xlu0 %v2413_v41 }
0x12b9   :  { %2417 = vmax.xlane.f32.xlu0 %v2416_v24 }
0x1330   :  { %v2412_v43 = vpop.xlane.xlu1 %2411 }
0x1331   :  { %v2420_v44 = vsub.f32 %v2404_v32, %v2412_v43  ;;  %v2409_v46 = vpop.xlane.xlu0 %2408  ;;  %v185_v32 = vld [vmem:[%s4772_s7 + $0x38] sm:$0xff] }
0x1332   :  { %v2419_v52 = vsub.f32 %v2403_v33, %v2409_v46  ;;  %v3762_v33 = vpack.c.bf16 %v185_v32, %v184_v31  ;;  %v3171_v46 = vld [vmem:[%s4773_s8 + $0x1] ss:$0 sm:$0xff] }
0x1333   :  { %v2425_v53 = vmul.f32 1.442695, %v2420_v44 }
0x1334   :  { %v2423_v59 = vmul.f32 1.442695, %v2419_v52 }
0x1335   :  { %3958 = vpow2.f32 %v2425_v53 }
0x1336   :  { %3960 = vpow2.f32 %v2423_v59 }
0x133f   :  { %v3959_v55 = vpop.eup %3958 }
0x1340   :  { %v3961_v58 = vpop.eup %3960  ;;  %v2434_v60 = vsel %vm383_vm1, %v3959_v55, 0.0 }
0x1341   :  { %2435 = vadd.xlane.f32.xlu1 %v2434_v60  ;;  %v2431_v61 = vsel %vm383_vm1, %v3961_v58, 0.0 }
0x1342   :  { %v2415_v3 = vpop.xlane.xlu0 %2414  ;;  %2432 = vadd.xlane.f32.xlu0 %v2431_v61 }
0x1343   :  { %v2421_v63 = vsub.f32 %v2405_v25, %v2415_v3 }
0x1345   :  { %v2427_v0 = vmul.f32 1.442695, %v2421_v63 }
0x1346   :  { %v2418_v39 = vpop.xlane.xlu0 %2417 }
0x1347   :  { %3962 = vpow2.f32 %v2427_v0  ;;  %v2422_v45 = vsub.f32 %v2406_v42, %v2418_v39 }
0x1349   :  { %v2429_v56 = vmul.f32 1.442695, %v2422_v45 }
0x134b   :  { %3964 = vpow2.f32 %v2429_v56 }
0x1351   :  { %v3963_v51 = vpop.eup %3962 }
0x1352   :  { %v2437_v2 = vsel %vm383_vm1, %v3963_v51, 0.0 }
0x1353   :  { %2438 = vadd.xlane.f32.xlu0 %v2437_v2 }
0x1355   :  { %v3965_v7 = vpop.eup %3964 }
0x1356   :  { %v2440_v5 = vsel %vm383_vm1, %v3965_v7, 0.0 }
0x1357   :  { %2441 = vadd.xlane.f32.xlu1 %v2440_v5 }
0x1368   :  { %3876 = vrot.lane.b32.xlu1 %v4554_v6, %s4019_s30 }
0x1369   :  { %3871 = vrot.lane.b32.xlu0 %v4542_v48, %s4019_s30 }
0x13ce   :  { %v2436_v49 = vpop.xlane.xlu1 %2435 }
0x13cf   :  { %v2433_v50 = vpop.xlane.xlu0 %2432 }
0x13d0   :  { %3966 = vrcp.f32 %v2433_v50 }
0x13d1   :  { %3968 = vrcp.f32 %v2436_v49 }
0x13da   :  { %v3967_v4 = vpop.eup %3966 }
0x13db   :  { %v2444_v8 = vmul.f32 %v3967_v4, %v3961_v58  ;;  %v3969_v6 = vpop.eup %3968 }
0x13dc   :  { %v2446_v17 = vmul.f32 %v3969_v6, %v3959_v55 }
0x13dd   :  { %3538 = vmatprep.mubr.msk.f32.mxu0 %vm383_vm1, %v2444_v8 }
0x13e0   :  { %v2439_v47 = vpop.xlane.xlu0 %2438 }
0x13e1   :  { %3970 = vrcp.f32 %v2439_v47 }
0x13e4   :  { %v2442_v9 = vpop.xlane.xlu1 %2441  ;;  %v3872_v10 = vpop.permute.xlu0 %3871 }
0x13e5   :  { %3972 = vrcp.f32 %v2442_v9  ;;  %v3874_v11 = vunpack.i.h.bf16 %v3872_v10  ;;  %v3873_v12 = vunpack.i.l.bf16 %v3872_v10 }
0x13e7   :  { %v3750_v13 = vpack.c.bf16 %v3874_v11, %v3873_v12 }
0x13e8   :  { %v3877_v14 = vpop.permute.xlu1 %3876 }
0x13e9   :  { %v3879_v15 = vunpack.i.h.bf16 %v3877_v14  ;;  %v3878_v48 = vunpack.i.l.bf16 %v3877_v14  ;;  %3751 = vmatprep.subr.bf16.mxu0 %v3750_v13  ;;  %v196_v14 = vld [vmem:[%s4776_s11 + $0x20] sm:$0xff] }
0x13ea   :  { %3753 = vmatpush3.bf16.msra.mxu0 %v3750_v13 }
0x13eb   :  { %v3971_v16 = vpop.eup %3970  ;;  %v3754_v19 = vpack.c.bf16 %v3879_v15, %v3878_v48  ;;  %3759 = vmatprep.subr.bf16.mxu0 %v3758_v30  ;;  %v197_v15 = vld [vmem:[%s4776_s11 + $0x28] sm:$0xff] }
0x13ec   :  { %v2448_v21 = vmul.f32 %v3971_v16, %v3963_v51  ;;  %v3766_v48 = vpack.c.bf16 %v197_v15, %v196_v14  ;;  %v198_v16 = vld [vmem:[%s4776_s11 + $0x30] sm:$0xff] }
0x13ed   :  { %3539 = vmatmul.mubr.msk.f32.vlgmr.msra.gmra.mrb[16].mxu0 %vm383_vm1, %v2446_v17  ;;  %3755 = vmatprep.subr.bf16.mxu1 %v3754_v19  ;;  %v199_v17 = vld [vmem:[%s4776_s11 + $0x38] sm:$0xff] }
0x13ee   :  { %3757 = vmatpush3.bf16.msra.mxu1 %v3754_v19  ;;  %3545 = vmatprep.mubr.msk.f32.mxu1 %vm383_vm1, %v2448_v21  ;;  %v3770_v19 = vpack.c.bf16 %v199_v17, %v198_v16 }
0x13ef   :  { %v3973_v22 = vpop.eup %3972  ;;  %3761 = vmatpush3.bf16.msra.mxu0 %v3758_v30  ;;  %3767 = vmatprep.subr.bf16.mxu1 %v3766_v48 }
0x13f0   :  { %v2450_v23 = vmul.f32 %v3973_v22, %v3965_v7  ;;  %3763 = vmatprep.subr.bf16.mxu0 %v3762_v33 }
0x13f2   :  { %3546 = vmatmul.mubr.msk.f32.vlgmr.msra.gmra.mrb[36].mxu1 %vm383_vm1, %v2450_v23 }
0x13f3   :  { %3765 = vmatpush3.bf16.msra.mxu0 %v3762_v33  ;;  %3769 = vmatpush3.bf16.msra.mxu1 %v3766_v48 }
0x13f4   :  { %3771 = vmatprep.subr.bf16.mxu1 %v3770_v19 }
0x13f7   :  { %3773 = vmatpush3.bf16.msra.mxu1 %v3770_v19 }
0x14c0   :  { %v3540_v54 = vpop.f32.mrb[16].mxu0 }
0x14c1   :  { %v2529_v34 = vpop.f32.mrb[17].mxu0 }
0x14c2   :  { %2629 = vrot.lane.b32.xlu1 %v2529_v34, %s4020_s21 }
0x14c5   :  { %v3547_v20 = vpop.f32.mrb[36].mxu1 }
0x14c6   :  { %v2616_v37 = vpop.f32.mrb[37].mxu1  ;;  %2631 = vrot.lane.b32.xlu1 %v3540_v54, %s4020_s21 }
0x14c7   :  { %2633 = vrot.lane.b32.xlu0 %v2616_v37, %s4020_s21 }
0x14ca   :  { %2635 = vrot.lane.b32.xlu1 %v3547_v20, %s4020_s21 }
0x1534   :  { %v2630_v18 = vpop.permute.xlu1 %2629 }
0x1535   :  { %v2641_v38 = vsel %vm383_vm1, %v4616_v27, %v2630_v18  ;;  %v3172_v18 = vld [vmem:[%s4774_s9 + $0x1] ss:$0 sm:$0xff] }
0x1536   :  { %3556 = vmatprep.mubr.msk.f32.mxu0 %vm224_vm0, %v2641_v38 }
0x1538   :  { %v2632_v25 = vpop.permute.xlu1 %2631 }
0x1539   :  { %v2642_v41 = vsel %vm383_vm1, %v4614_v26, %v2632_v25  ;;  %v2634_v42 = vpop.permute.xlu0 %2633 }
0x153a   :  { %v2643_v24 = vsel %vm383_vm1, %v4624_v36, %v2634_v42  ;;  %3557 = vmatmul.mubr.msk.f32.vlgmr.msra.gmra.mrb[18].mxu0 %vm224_vm0, %v2642_v41  ;;  %v3173_v42 = vld [vmem:[%s4775_s10 + $0x1] ss:$0 sm:$0xff] }
0x153b   :  { %3559 = vmatprep.mubr.msk.f32.mxu0 %vm224_vm0, %v2643_v24 }
0x153c   :  { %v2636_v43 = vpop.permute.xlu1 %2635 }
0x153d   :  { %v2644_v44 = vsel %vm383_vm1, %v4622_v35, %v2636_v43 }
0x153e   :  { %3560 = vmatmul.mubr.msk.f32.gmra.mrb[20].mxu0 %vm224_vm0, %v2644_v44 }
0x160d   :  { %v3558_v27 = vpop.f32.mrb[18].mxu0 }
0x160e   :  { %v2743_v26 = vadd.f32 %v3558_v27, %v4486_v62  ;;  %v2723_v52 = vpop.f32.mrb[19].mxu0 }
0x160f   :  { %v2742_v36 = vadd.f32 %v2723_v52, %v4488_v57 }
0x1610   :  { %v2753_v53 = vadd.f32 %v3171_v46, %v2743_v26 }
0x1611   :  { %v4675_v59 = vadd.f32 %v3171_v46, %v2742_v36  ;;  %v3561_v55 = vpop.f32.mrb[20].mxu0 }
0x1612   :  { %v2733_v58 = vpop.f32.mrb[21].mxu0  ;;  %v2759_v60 = vsel %vm224_vm0, %v2753_v53, 0.0  ;;  %v2745_v35 = vadd.f32 %v3561_v55, %v4496_v1 }
0x1613   :  { %v2744_v61 = vadd.f32 %v2733_v58, %v4498_v40  ;;  %2760 = vadd.xlane.f32.xlu1 %v2759_v60  ;;  %v2756_v3 = vsel %vm224_vm0, %v4675_v59, 0.0 }
0x1614   :  { %2757 = vadd.xlane.f32.xlu0 %v2756_v3  ;;  %v2755_v63 = vadd.f32 %v3171_v46, %v2745_v35  ;;  %v210_v35 = vld [vmem:[%s4778_s13 + $0x40] sm:$0xff] }
0x1615   :  { %v4682_v62 = vadd.f32 %v3171_v46, %v2744_v61  ;;  %v211_v61 = vld [vmem:[%s4778_s13 + $0x48] sm:$0xff] }
0x1616   :  { %v2765_v0 = vsel %vm224_vm0, %v2755_v63, 0.0  ;;  %v3774_v3 = vpack.c.bf16 %v211_v61, %v210_v35 }
0x1617   :  { %v2762_v57 = vsel %vm224_vm0, %v4682_v62, 0.0 }
0x1618   :  { %2763 = vadd.xlane.f32.xlu0 %v2762_v57  ;;  %3775 = vmatprep.subr.bf16.mxu0 %v3774_v3  ;;  %v212_v57 = vld [vmem:[%s4778_s13 + $0x50] sm:$0xff] }
0x1619   :  { %3777 = vmatpush3.bf16.msra.mxu0 %v3774_v3 }
0x161c   :  { %2766 = vadd.xlane.f32.xlu0 %v2765_v0 }
0x16a0   :  { %v2761_v39 = vpop.xlane.xlu1 %2760 }
0x16a1   :  { %v2769_v45 = vmul.f32 0.03125, %v2761_v39  ;;  %v2758_v1 = vpop.xlane.xlu0 %2757  ;;  %v214_v39 = vld [vmem:[%s4778_s13 + $0x60] sm:$0xff] }
0x16a2   :  { %v2768_v56 = vmul.f32 0.03125, %v2758_v1 }
0x16a3   :  { %v2773_v40 = vsub.f32 %v2753_v53, %v2769_v45  ;;  %v215_v45 = vld [vmem:[%s4778_s13 + $0x68] sm:$0xff] }
0x16a4   :  { %v2772_v51 = vsub.f32 %v4675_v59, %v2768_v56  ;;  %v3782_v1 = vpack.c.bf16 %v215_v45, %v214_v39  ;;  %v216_v56 = vld [vmem:[%s4778_s13 + $0x70] sm:$0xff] }
0x16a5   :  { %v2764_v2 = vpop.xlane.xlu0 %2763  ;;  %v2777_v7 = vmul.f32 %v2773_v40, %v2773_v40 }
0x16a6   :  { %v2770_v5 = vmul.f32 0.03125, %v2764_v2  ;;  %v2776_v50 = vmul.f32 %v2772_v51, %v2772_v51  ;;  %v3174_v2 = vld [vmem:[%s4777_s12 + $0x1] ss:$0 sm:$0xff] }
0x16a7   :  { %v2783_v4 = vsel %vm224_vm0, %v2777_v7, 0.0 }
0x16a8   :  { %v2774_v49 = vsub.f32 %v4682_v62, %v2770_v5  ;;  %2784 = vadd.xlane.f32.xlu1 %v2783_v4  ;;  %v2780_v8 = vsel %vm224_vm0, %v2776_v50, 0.0 }
0x16a9   :  { %2781 = vadd.xlane.f32.xlu0 %v2780_v8  ;;  %v2767_v47 = vpop.xlane.xlu0 %2766 }
0x16aa   :  { %v2771_v9 = vmul.f32 0.03125, %v2767_v47  ;;  %v2778_v10 = vmul.f32 %v2774_v49, %v2774_v49 }
0x16ac   :  { %v2775_v11 = vsub.f32 %v2755_v63, %v2771_v9  ;;  %v2786_v12 = vsel %vm224_vm0, %v2778_v10, 0.0  ;;  %v213_v63 = vld [vmem:[%s4778_s13 + $0x58] sm:$0xff] }
0x16ad   :  { %2787 = vadd.xlane.f32.xlu0 %v2786_v12  ;;  %v3778_v0 = vpack.c.bf16 %v213_v63, %v212_v57 }
0x16ae   :  { %v2779_v13 = vmul.f32 %v2775_v11, %v2775_v11 }
0x16af   :  { %3779 = vmatprep.subr.bf16.mxu0 %v3778_v0 }
0x16b0   :  { %v2789_v6 = vsel %vm224_vm0, %v2779_v13, 0.0  ;;  %3781 = vmatpush3.bf16.msra.mxu0 %v3778_v0 }
0x16b1   :  { %2790 = vadd.xlane.f32.xlu1 %v2789_v6  ;;  %3783 = vmatprep.subr.bf16.mxu0 %v3782_v1 }
0x16b4   :  { %3785 = vmatpush3.bf16.msra.mxu0 %v3782_v1 }
0x1735   :  { %v2785_v21 = vpop.xlane.xlu1 %2784 }
0x1736   :  { %v2793_v22 = vmul.f32 0.03125, %v2785_v21  ;;  %v2782_v23 = vpop.xlane.xlu0 %2781 }
0x1737   :  { %v2792_v28 = vmul.f32 0.03125, %v2782_v23 }
0x1738   :  { %v2797_v29 = vadd.f32 1e-05, %v2793_v22 }
0x1739   :  { %v2796_v30 = vadd.f32 1e-05, %v2792_v28 }
0x173a   :  { %3974 = vrsqrt.f32 %v2797_v29  ;;  %v2788_v31 = vpop.xlane.xlu0 %2787 }
0x173b   :  { %3976 = vrsqrt.f32 %v2796_v30  ;;  %v2794_v32 = vmul.f32 0.03125, %v2788_v31 }
0x173d   :  { %v2798_v33 = vadd.f32 1e-05, %v2794_v32 }
0x173e   :  { %v2791_v54 = vpop.xlane.xlu1 %2790 }
0x173f   :  { %3978 = vrsqrt.f32 %v2798_v33  ;;  %v2795_v34 = vmul.f32 0.03125, %v2791_v54 }
0x1741   :  { %v2799_v20 = vadd.f32 1e-05, %v2795_v34 }
0x1743   :  { %3980 = vrsqrt.f32 %v2799_v20 }
0x1744   :  { %v3975_v37 = vpop.eup %3974 }
0x1745   :  { %v3977_v38 = vpop.eup %3976  ;;  %v2805_v25 = vmul.f32 %v3975_v37, %v2773_v40  ;;  %v217_v40 = vld [vmem:[%s4778_s13 + $0x78] sm:$0xff] }
0x1746   :  { %v2804_v41 = vmul.f32 %v3977_v38, %v2772_v51  ;;  %v3786_v51 = vpack.c.bf16 %v217_v40, %v216_v56 }
0x1747   :  { %v2815_v24 = vmul.f32 %v3172_v18, %v2805_v25 }
0x1748   :  { %v2814_v43 = vmul.f32 %v3172_v18, %v2804_v41  ;;  %3787 = vmatprep.subr.bf16.mxu0 %v3786_v51 }
0x1749   :  { %v3979_v44 = vpop.eup %3978  ;;  %v2825_v26 = vadd.f32 %v3173_v42, %v2815_v24  ;;  %3789 = vmatpush3.bf16.msra.mxu0 %v3786_v51 }
0x174a   :  { %v2824_v27 = vadd.f32 %v3173_v42, %v2814_v43  ;;  %v2806_v46 = vmul.f32 %v3979_v44, %v2774_v49 }
0x174c   :  { %3570 = vmatprep.mubr.msk.f32.mxu1 %vm224_vm0, %v2824_v27  ;;  %v2816_v52 = vmul.f32 %v3172_v18, %v2806_v46 }
0x174d   :  { %v3981_v36 = vpop.eup %3980  ;;  %3571 = vmatmul.mubr.msk.f32.vlgmr.msra.gmra.mrb[38].mxu1 %vm224_vm0, %v2825_v26 }
0x174e   :  { %v2826_v53 = vadd.f32 %v3173_v42, %v2816_v52  ;;  %v2807_v55 = vmul.f32 %v3981_v36, %v2775_v11 }
0x1750   :  { %3573 = vmatprep.mubr.msk.f32.mxu1 %vm224_vm0, %v2826_v53  ;;  %v2817_v58 = vmul.f32 %v3172_v18, %v2807_v55  ;;  %v3183_v53 = vld [vmem:[%s4779_s14 + $0x1] ss:$0 sm:$0xff] }
0x1752   :  { %v2827_v60 = vadd.f32 %v3173_v42, %v2817_v58 }
0x1754   :  { %3574 = vmatmul.mubr.msk.f32.gmra.mrb[40].mxu1 %vm224_vm0, %v2827_v60 }
0x1820   :  { %v3572_v7 = vpop.f32.mrb[38].mxu1 }
0x1821   :  { %v2918_v5 = vadd.f32 %v3572_v7, %v3174_v2  ;;  %v2912_v50 = vpop.f32.mrb[39].mxu1 }
0x1822   :  { %v2913_v4 = vadd.f32 %v3174_v2, %v2912_v50 }
0x1823   :  { %v2932_v49 = vmul.f32 %v2918_v5, %v2918_v5 }
0x1824   :  { %v2931_v8 = vmul.f32 %v2913_v4, %v2913_v4 }
0x1825   :  { %v2936_v47 = vmul.f32 %v2932_v49, %v2918_v5 }
0x1826   :  { %v2935_v9 = vmul.f32 %v2931_v8, %v2913_v4 }
0x1827   :  { %v2940_v10 = vmul.f32 0.044715, %v2936_v47  ;;  %v3575_v11 = vpop.f32.mrb[40].mxu1 }
0x1828   :  { %v2939_v12 = vmul.f32 0.044715, %v2935_v9  ;;  %v2928_v13 = vadd.f32 %v3575_v11, %v3174_v2  ;;  %v2922_v6 = vpop.f32.mrb[41].mxu1 }
0x1829   :  { %v2944_v14 = vadd.f32 %v2940_v10, %v2918_v5  ;;  %v2923_v15 = vadd.f32 %v3174_v2, %v2922_v6 }
0x182a   :  { %v2943_v48 = vadd.f32 %v2939_v12, %v2913_v4  ;;  %v2934_v16 = vmul.f32 %v2928_v13, %v2928_v13 }
0x182b   :  { %v2948_v17 = vmul.f32 0.7978846, %v2944_v14  ;;  %v2933_v19 = vmul.f32 %v2923_v15, %v2923_v15 }
0x182c   :  { %v2947_v21 = vmul.f32 0.7978846, %v2943_v48  ;;  %v2938_v22 = vmul.f32 %v2934_v16, %v2928_v13 }
0x182d   :  { %3982 = vtanh.f32 %v2948_v17  ;;  %v2937_v23 = vmul.f32 %v2933_v19, %v2923_v15 }
0x182e   :  { %3984 = vtanh.f32 %v2947_v21  ;;  %v2942_v28 = vmul.f32 0.044715, %v2938_v22 }
0x182f   :  { %v2941_v29 = vmul.f32 0.044715, %v2937_v23 }
0x1830   :  { %v2946_v30 = vadd.f32 %v2942_v28, %v2928_v13 }
0x1831   :  { %v2945_v31 = vadd.f32 %v2941_v29, %v2923_v15 }
0x1832   :  { %v2950_v32 = vmul.f32 0.7978846, %v2946_v30 }
0x1833   :  { %v2949_v33 = vmul.f32 0.7978846, %v2945_v31 }
0x1834   :  { %3986 = vtanh.f32 %v2950_v32 }
0x1835   :  { %3988 = vtanh.f32 %v2949_v33 }
0x1837   :  { %v3983_v54 = vpop.eup %3982 }
0x1838   :  { %v3985_v34 = vpop.eup %3984  ;;  %v2956_v20 = vadd.f32 1.0, %v3983_v54 }
0x1839   :  { %v2955_v37 = vadd.f32 1.0, %v3985_v34 }
0x183a   :  { %v2960_v18 = vmul.f32 0.5, %v2956_v20 }
0x183b   :  { %v2959_v38 = vmul.f32 0.5, %v2955_v37 }
0x183c   :  { %v2964_v42 = vmul.f32 %v2960_v18, %v2918_v5 }
0x183d   :  { %v2963_v25 = vmul.f32 %v2959_v38, %v2913_v4 }
0x183e   :  { %v3987_v41 = vpop.eup %3986 }
0x183f   :  { %v3989_v24 = vpop.eup %3988  ;;  %3592 = vmatprep.mubr.msk.f32.mxu0 %vm1532_vm4, %v2963_v25  ;;  %v2958_v43 = vadd.f32 1.0, %v3987_v41 }
0x1840   :  { %3593 = vmatmul.mubr.msk.f32.vlgmr.msra.gmra.mrb[22].mxu0 %vm1532_vm4, %v2964_v42  ;;  %v2957_v44 = vadd.f32 1.0, %v3989_v24 }
0x1841   :  { %v2962_v27 = vmul.f32 0.5, %v2958_v43 }
0x1842   :  { %v2961_v46 = vmul.f32 0.5, %v2957_v44 }
0x1843   :  { %v2966_v52 = vmul.f32 %v2962_v27, %v2928_v13 }
0x1844   :  { %v2965_v26 = vmul.f32 %v2961_v46, %v2923_v15 }
0x1846   :  { %3595 = vmatprep.mubr.msk.f32.mxu0 %vm1532_vm4, %v2965_v26 }
0x1847   :  { %3596 = vmatmul.mubr.msk.f32.gmra.mrb[24].mxu0 %vm1532_vm4, %v2966_v52 }
0x1913   :  { %v3594_v36 = vpop.f32.mrb[22].mxu0 }
0x1914   :  { %v3045_v55 = vpop.f32.mrb[23].mxu0 }
0x1915   :  { %v3062_v58 = vadd.f32 %v3045_v55, %v4675_v59 }
0x1917   :  { %v3070_v60 = vadd.f32 %v3183_v53, %v3062_v58 }
0x1919   :  { %3072 = vst.msk [vmem:[#allocation2] sm:$0xff] %vm224_vm0, %v3070_v60 }
0x191a   :  { %v3597_v35 = vpop.f32.mrb[24].mxu0 }
0x191b   :  { %v3054_v61 = vpop.f32.mrb[25].mxu0 }
0x191c   :  { %v3063_v3 = vadd.f32 %v3054_v61, %v4682_v62 }
0x191e   :  { %v3071_v57 = vadd.f32 %v3183_v53, %v3063_v3 }
0x1920   :  { %3073 = vst.msk [vmem:[#allocation2 + $0x8] sm:$0xff] %vm224_vm0, %v3071_v57 }
0x1921   :  { %4001 = shalt.err (!%p3998_p4)
}
0x1922   :  { %s4002_s22 = scalar_lea.hbm %s4780_s15, 256 }
0x1923   :  { %p4003_p5 = scmp.ne.s32.totalorder %s4780_s15, %s4002_s22  ;;  %p4006_p6 = scmp.lt.u32.totalorder %s4002_s22, %s4780_s15 }
0x1925   :  { %p4008_p7 = pnand %p4006_p6, %p4003_p5 }
0x1927   :  { %4011 = shalt.err (!%p4008_p7)
}
0x1928   :  { %s4022_s9 = smov 128   ;;  %s4023_s10 = smov 8  }
0x1929   :  { %3085 = dma.vmem_to_hbm [thread:$0]  %s3080_s18, 256, %s4780_s15, [#allocation3], %s4022_s9, %s4022_s9, %s4023_s10  }
0x192a   :  { %4012 = dma.done.wait [#allocation3], 256  }
0x192b   :  { %4013 = vsyncadd [#allocation3], 4294967040 }
0x192c   :  { %3089 = vsyncpa [#allocation3], 1 }

</bundles_post_ra>
